<compile_context>
chip_gen: v7x
topology: tpu7x:2x2x1
jax: 0.10.0
libtpu: 0.0.40
codegen_flags: <defaults>
</compile_context>

<pallas_src>
import functools

import jax
import jax.numpy as jnp
from jax.experimental import pallas as pl
from jax.experimental.pallas import tpu as pltpu


H1, H2, H3 = 1028, 512, 128          # logical hidden widths (from the PyTorch spec)
H1_PAD = 1152                        # 1028 padded up to a multiple of 128
LANE = 128


# ---------------------------------------------------------------------------
# Kernel helpers (traced inside the Pallas kernel body) -- all f32 math.
# ---------------------------------------------------------------------------
def _leaky_relu(x, slope=0.1):
    return jnp.where(x > 0, x, slope * x)


def _batchnorm_train(x, gamma, beta, eps=1e-5):
    # Training-mode BatchNorm1d: batch statistics, biased variance.
    mean = jnp.mean(x, axis=0, keepdims=True)
    centered = x - mean                              # reused for var + normalize
    var = jnp.mean(centered * centered, axis=0, keepdims=True)
    return centered * jax.lax.rsqrt(var + eps) * gamma + beta


# ---------------------------------------------------------------------------
# Pallas kernel: whole encoder forward in one grid step.
# ---------------------------------------------------------------------------
def _encoder_kernel(
    xc_ref,
    w1_ref, b1_ref, g1_ref, be1_ref,
    w2_ref, b2_ref, g2_ref, be2_ref,
    w3_ref, b3_ref, g3_ref, be3_ref,
    wh_ref, bh_ref,
    out_ref,
):
    xc = xc_ref[...]                                 # bf16 (B, in+cond)

    # Block 1: Linear(in -> 1028 [padded 1152]) + LeakyReLU(0.1) + BatchNorm1d
    h1 = jnp.dot(xc, w1_ref[...], preferred_element_type=jnp.float32) + b1_ref[...]
    h1 = _batchnorm_train(_leaky_relu(h1), g1_ref[...], be1_ref[...])

    # Block 2: Linear(1028 -> 512) + LeakyReLU(0.1) + BatchNorm1d
    h2 = jnp.dot(h1.astype(jnp.bfloat16), w2_ref[...],
                 preferred_element_type=jnp.float32) + b2_ref[...]
    h2 = _batchnorm_train(_leaky_relu(h2), g2_ref[...], be2_ref[...])

    # Block 3: Linear(512 -> 128) + LeakyReLU(0.1) + BatchNorm1d
    h3 = jnp.dot(h2.astype(jnp.bfloat16), w3_ref[...],
                 preferred_element_type=jnp.float32) + b3_ref[...]
    h3 = _batchnorm_train(_leaky_relu(h3), g3_ref[...], be3_ref[...])

    # Fused mu||logvar head -> one lane-dense (B, 128) store.
    out_ref[...] = (
        jnp.dot(h3.astype(jnp.bfloat16), wh_ref[...],
                preferred_element_type=jnp.float32) + bh_ref[...]
    )


# ---------------------------------------------------------------------------
# Wrapper
# ---------------------------------------------------------------------------
def encoder_forward(x, c, kparams, latent_size):
    """x: (B, input_size), c: (B, condition_size) -> (mu, logvar), each (B, latent)."""
    xc = jnp.concatenate([x, c], axis=1).astype(jnp.bfloat16)   # torch.cat
    B = xc.shape[0]
    head_pad = kparams["wh"].shape[1]

    args = (
        xc,
        kparams["w1"], kparams["b1"], kparams["g1"], kparams["be1"],
        kparams["w2"], kparams["b2"], kparams["g2"], kparams["be2"],
        kparams["w3"], kparams["b3"], kparams["g3"], kparams["be3"],
        kparams["wh"], kparams["bh"],
    )

    vmem_spec = pl.BlockSpec(memory_space=pltpu.MemorySpace.VMEM)

    out = pl.pallas_call(
        _encoder_kernel,
        out_shape=jax.ShapeDtypeStruct((B, head_pad), jnp.float32),
        in_specs=[vmem_spec] * len(args),
        out_specs=vmem_spec,
    )(*args)

    mu = out[:, :latent_size]
    logvar = out[:, latent_size:2 * latent_size]
    return mu, logvar


# ---------------------------------------------------------------------------
# Deterministic parameter init (PyTorch-style uniform +/- 1/sqrt(fan_in)),
# at the *logical* sizes from the spec.
# ---------------------------------------------------------------------------
def init_params(key, input_size, condition_size, latent_size):
    dims = [
        (input_size + condition_size, H1),
        (H1, H2),
        (H2, H3),
    ]
    params = {}
    keys = jax.random.split(key, 16)
    ki = 0

    def linear(fan_in, fan_out):
        nonlocal ki
        bound = 1.0 / (fan_in ** 0.5)
        # Stored as (in, out): equivalent to torch weight (out, in) transposed.
        w = jax.random.uniform(keys[ki], (fan_in, fan_out), jnp.float32, -bound, bound)
        b = jax.random.uniform(keys[ki + 1], (1, fan_out), jnp.float32, -bound, bound)
        ki += 2
        return w, b

    for i, (fi, fo) in enumerate(dims, start=1):
        w, b = linear(fi, fo)
        params[f"w{i}"] = w
        params[f"b{i}"] = b
        params[f"g{i}"] = jnp.ones((1, fo), jnp.float32)    # BN gamma init
        params[f"be{i}"] = jnp.zeros((1, fo), jnp.float32)  # BN beta init

    params["wmu"], params["bmu"] = linear(H3, latent_size)
    params["wvar"], params["bvar"] = linear(H3, latent_size)
    return params


# ---------------------------------------------------------------------------
# Pack params for the kernel: pad layer-1 width 1028 -> 1152, zero the matching
# rows of w2, fuse + pad the heads to a full 128-lane output, cast weight
# matrices to bf16 (biases / BN affine stay f32).
# ---------------------------------------------------------------------------
def pack_params(p, latent_size):
    def pad_cols(a, target, value=0.0):
        return jnp.pad(a, ((0, 0), (0, target - a.shape[1])), constant_values=value)

    kp = {}
    # Layer 1 (padded columns: weight=0, bias=0, gamma=1, beta=0 -> pad cols stay 0)
    kp["w1"] = pad_cols(p["w1"], H1_PAD).astype(jnp.bfloat16)
    kp["b1"] = pad_cols(p["b1"], H1_PAD)
    kp["g1"] = pad_cols(p["g1"], H1_PAD, 1.0)
    kp["be1"] = pad_cols(p["be1"], H1_PAD, 0.0)

    # Layer 2: zero-pad the K dimension so padded h1 columns cannot leak.
    kp["w2"] = jnp.pad(p["w2"], ((0, H1_PAD - H1), (0, 0))).astype(jnp.bfloat16)
    kp["b2"], kp["g2"], kp["be2"] = p["b2"], p["g2"], p["be2"]

    # Layer 3
    kp["w3"] = p["w3"].astype(jnp.bfloat16)
    kp["b3"], kp["g3"], kp["be3"] = p["b3"], p["g3"], p["be3"]

    # Fused mu||logvar head, padded to a full 128-lane output slab.
    head_pad = max(LANE, ((2 * latent_size + LANE - 1) // LANE) * LANE)
    wh = jnp.concatenate([p["wmu"], p["wvar"]], axis=1)
    bh = jnp.concatenate([p["bmu"], p["bvar"]], axis=1)
    kp["wh"] = pad_cols(wh, head_pad).astype(jnp.bfloat16)
    kp["bh"] = pad_cols(bh, head_pad)
    return kp


if __name__ == "__main__":
    input_size = 24
    condition_size = 8
    latent_size = 16
    batch = 8

    key = jax.random.PRNGKey(0)
    kparam, kx, kc = jax.random.split(key, 3)

    params = init_params(kparam, input_size, condition_size, latent_size)
    kparams = pack_params(params, latent_size)

    x = jax.random.normal(kx, (batch, input_size), jnp.float32)
    c = jax.random.normal(kc, (batch, condition_size), jnp.float32)

    fwd = jax.jit(functools.partial(encoder_forward, kparams=kparams,
                                    latent_size=latent_size))
    mu, logvar = fwd(x, c)
    jax.block_until_ready((mu, logvar))

    assert mu.shape == (batch, latent_size)
    assert logvar.shape == (batch, latent_size)
    # TODO(synk): fp8 (v7x) / int8 (v6e) weight quantization for w2 left out to
    # preserve reference numerics; bf16 weights already halve the DMA bytes.
    print("KERNEL_OK")
</pallas_src>

<mosaic_0001>
module attributes {stable_mosaic.version = 11 : i64} {
  func.func @_encoder_kernel(%arg0: memref<8x32xbf16, #tpu.memory_space<vmem>>, %arg1: memref<32x1152xbf16, #tpu.memory_space<vmem>>, %arg2: memref<1x1152xf32, #tpu.memory_space<vmem>>, %arg3: memref<1x1152xf32, #tpu.memory_space<vmem>>, %arg4: memref<1x1152xf32, #tpu.memory_space<vmem>>, %arg5: memref<1152x512xbf16, #tpu.memory_space<vmem>>, %arg6: memref<1x512xf32, #tpu.memory_space<vmem>>, %arg7: memref<1x512xf32, #tpu.memory_space<vmem>>, %arg8: memref<1x512xf32, #tpu.memory_space<vmem>>, %arg9: memref<512x128xbf16, #tpu.memory_space<vmem>>, %arg10: memref<1x128xf32, #tpu.memory_space<vmem>>, %arg11: memref<1x128xf32, #tpu.memory_space<vmem>>, %arg12: memref<1x128xf32, #tpu.memory_space<vmem>>, %arg13: memref<128x128xbf16, #tpu.memory_space<vmem>>, %arg14: memref<1x128xf32, #tpu.memory_space<vmem>>, %arg15: memref<8x128xf32, #tpu.memory_space<vmem>>) attributes {dimension_semantics = [], scalar_prefetch = 0 : i64, scratch_operands = 0 : i64, tpu.core_type = #tpu.core_type<tc>} {
    %c0 = arith.constant 0 : index
    %c0_0 = arith.constant 0 : index
    %0 = vector.load %arg0[%c0, %c0_0] : memref<8x32xbf16, #tpu.memory_space<vmem>>, vector<8x32xbf16>
    %c0_1 = arith.constant 0 : index
    %c0_2 = arith.constant 0 : index
    %1 = vector.load %arg1[%c0_1, %c0_2] : memref<32x1152xbf16, #tpu.memory_space<vmem>>, vector<32x1152xbf16>
    %cst = arith.constant dense<0.000000e+00> : vector<8x1152xf32>
    %2 = tpu.matmul %0, %1, %cst {dimension_numbers = #tpu.dot_dimension_numbers<[1], [0], [0], [1], [0, 0, 1, 1], [], []>} : vector<8x32xbf16>, vector<32x1152xbf16>, vector<8x1152xf32> -> vector<8x1152xf32>
    %c0_3 = arith.constant 0 : index
    %c0_4 = arith.constant 0 : index
    %3 = vector.load %arg2[%c0_3, %c0_4] : memref<1x1152xf32, #tpu.memory_space<vmem>>, vector<1x1152xf32>
    %4 = vector.broadcast %3 : vector<1x1152xf32> to vector<8x1152xf32>
    %5 = arith.addf %2, %4 : vector<8x1152xf32>
    %cst_5 = arith.constant 0.000000e+00 : f32
    %6 = vector.broadcast %cst_5 : f32 to vector<8x1152xf32>
    %7 = arith.cmpf ogt, %5, %6 : vector<8x1152xf32>
    %cst_6 = arith.constant 1.000000e-01 : f32
    %8 = vector.broadcast %cst_6 : f32 to vector<8x1152xf32>
    %9 = arith.mulf %8, %5 : vector<8x1152xf32>
    %10 = arith.select %7, %5, %9 : vector<8x1152xi1>, vector<8x1152xf32>
    %c0_7 = arith.constant 0 : index
    %c0_8 = arith.constant 0 : index
    %11 = vector.load %arg3[%c0_7, %c0_8] : memref<1x1152xf32, #tpu.memory_space<vmem>>, vector<1x1152xf32>
    %c0_9 = arith.constant 0 : index
    %c0_10 = arith.constant 0 : index
    %12 = vector.load %arg4[%c0_9, %c0_10] : memref<1x1152xf32, #tpu.memory_space<vmem>>, vector<1x1152xf32>
    %cst_11 = arith.constant dense<0.000000e+00> : vector<1152xf32>
    %13 = vector.multi_reduction <add>, %10, %cst_11 [0] : vector<8x1152xf32> to vector<1152xf32>
    %14 = vector.shape_cast %13 : vector<1152xf32> to vector<1x1152xf32>
    %cst_12 = arith.constant 8.000000e+00 : f32
    %15 = vector.broadcast %cst_12 : f32 to vector<1x1152xf32>
    %16 = arith.divf %14, %15 : vector<1x1152xf32>
    %17 = vector.broadcast %16 : vector<1x1152xf32> to vector<8x1152xf32>
    %18 = arith.subf %10, %17 : vector<8x1152xf32>
    %19 = arith.mulf %18, %18 : vector<8x1152xf32>
    %cst_13 = arith.constant dense<0.000000e+00> : vector<1152xf32>
    %20 = vector.multi_reduction <add>, %19, %cst_13 [0] : vector<8x1152xf32> to vector<1152xf32>
    %21 = vector.shape_cast %20 : vector<1152xf32> to vector<1x1152xf32>
    %cst_14 = arith.constant 8.000000e+00 : f32
    %22 = vector.broadcast %cst_14 : f32 to vector<1x1152xf32>
    %23 = arith.divf %21, %22 : vector<1x1152xf32>
    %cst_15 = arith.constant 9.99999974E-6 : f32
    %24 = vector.broadcast %cst_15 : f32 to vector<1x1152xf32>
    %25 = arith.addf %23, %24 : vector<1x1152xf32>
    %26 = math.rsqrt %25 : vector<1x1152xf32>
    %27 = vector.broadcast %26 : vector<1x1152xf32> to vector<8x1152xf32>
    %28 = arith.mulf %18, %27 : vector<8x1152xf32>
    %29 = vector.broadcast %11 : vector<1x1152xf32> to vector<8x1152xf32>
    %30 = arith.mulf %28, %29 : vector<8x1152xf32>
    %31 = vector.broadcast %12 : vector<1x1152xf32> to vector<8x1152xf32>
    %32 = arith.addf %30, %31 : vector<8x1152xf32>
    %33 = arith.truncf %32 : vector<8x1152xf32> to vector<8x1152xbf16>
    %c0_16 = arith.constant 0 : index
    %c0_17 = arith.constant 0 : index
    %34 = vector.load %arg5[%c0_16, %c0_17] : memref<1152x512xbf16, #tpu.memory_space<vmem>>, vector<1152x512xbf16>
    %cst_18 = arith.constant dense<0.000000e+00> : vector<8x512xf32>
    %35 = tpu.matmul %33, %34, %cst_18 {dimension_numbers = #tpu.dot_dimension_numbers<[1], [0], [0], [1], [0, 0, 1, 1], [], []>} : vector<8x1152xbf16>, vector<1152x512xbf16>, vector<8x512xf32> -> vector<8x512xf32>
    %c0_19 = arith.constant 0 : index
    %c0_20 = arith.constant 0 : index
    %36 = vector.load %arg6[%c0_19, %c0_20] : memref<1x512xf32, #tpu.memory_space<vmem>>, vector<1x512xf32>
    %37 = vector.broadcast %36 : vector<1x512xf32> to vector<8x512xf32>
    %38 = arith.addf %35, %37 : vector<8x512xf32>
    %cst_21 = arith.constant 0.000000e+00 : f32
    %39 = vector.broadcast %cst_21 : f32 to vector<8x512xf32>
    %40 = arith.cmpf ogt, %38, %39 : vector<8x512xf32>
    %cst_22 = arith.constant 1.000000e-01 : f32
    %41 = vector.broadcast %cst_22 : f32 to vector<8x512xf32>
    %42 = arith.mulf %41, %38 : vector<8x512xf32>
    %43 = arith.select %40, %38, %42 : vector<8x512xi1>, vector<8x512xf32>
    %c0_23 = arith.constant 0 : index
    %c0_24 = arith.constant 0 : index
    %44 = vector.load %arg7[%c0_23, %c0_24] : memref<1x512xf32, #tpu.memory_space<vmem>>, vector<1x512xf32>
    %c0_25 = arith.constant 0 : index
    %c0_26 = arith.constant 0 : index
    %45 = vector.load %arg8[%c0_25, %c0_26] : memref<1x512xf32, #tpu.memory_space<vmem>>, vector<1x512xf32>
    %cst_27 = arith.constant dense<0.000000e+00> : vector<512xf32>
    %46 = vector.multi_reduction <add>, %43, %cst_27 [0] : vector<8x512xf32> to vector<512xf32>
    %47 = vector.shape_cast %46 : vector<512xf32> to vector<1x512xf32>
    %cst_28 = arith.constant 8.000000e+00 : f32
    %48 = vector.broadcast %cst_28 : f32 to vector<1x512xf32>
    %49 = arith.divf %47, %48 : vector<1x512xf32>
    %50 = vector.broadcast %49 : vector<1x512xf32> to vector<8x512xf32>
    %51 = arith.subf %43, %50 : vector<8x512xf32>
    %52 = arith.mulf %51, %51 : vector<8x512xf32>
    %cst_29 = arith.constant dense<0.000000e+00> : vector<512xf32>
    %53 = vector.multi_reduction <add>, %52, %cst_29 [0] : vector<8x512xf32> to vector<512xf32>
    %54 = vector.shape_cast %53 : vector<512xf32> to vector<1x512xf32>
    %cst_30 = arith.constant 8.000000e+00 : f32
    %55 = vector.broadcast %cst_30 : f32 to vector<1x512xf32>
    %56 = arith.divf %54, %55 : vector<1x512xf32>
    %cst_31 = arith.constant 9.99999974E-6 : f32
    %57 = vector.broadcast %cst_31 : f32 to vector<1x512xf32>
    %58 = arith.addf %56, %57 : vector<1x512xf32>
    %59 = math.rsqrt %58 : vector<1x512xf32>
    %60 = vector.broadcast %59 : vector<1x512xf32> to vector<8x512xf32>
    %61 = arith.mulf %51, %60 : vector<8x512xf32>
    %62 = vector.broadcast %44 : vector<1x512xf32> to vector<8x512xf32>
    %63 = arith.mulf %61, %62 : vector<8x512xf32>
    %64 = vector.broadcast %45 : vector<1x512xf32> to vector<8x512xf32>
    %65 = arith.addf %63, %64 : vector<8x512xf32>
    %66 = arith.truncf %65 : vector<8x512xf32> to vector<8x512xbf16>
    %c0_32 = arith.constant 0 : index
    %c0_33 = arith.constant 0 : index
    %67 = vector.load %arg9[%c0_32, %c0_33] : memref<512x128xbf16, #tpu.memory_space<vmem>>, vector<512x128xbf16>
    %cst_34 = arith.constant dense<0.000000e+00> : vector<8x128xf32>
    %68 = tpu.matmul %66, %67, %cst_34 {dimension_numbers = #tpu.dot_dimension_numbers<[1], [0], [0], [1], [0, 0, 1, 1], [], []>} : vector<8x512xbf16>, vector<512x128xbf16>, vector<8x128xf32> -> vector<8x128xf32>
    %c0_35 = arith.constant 0 : index
    %c0_36 = arith.constant 0 : index
    %69 = vector.load %arg10[%c0_35, %c0_36] : memref<1x128xf32, #tpu.memory_space<vmem>>, vector<1x128xf32>
    %70 = vector.broadcast %69 : vector<1x128xf32> to vector<8x128xf32>
    %71 = arith.addf %68, %70 : vector<8x128xf32>
    %cst_37 = arith.constant 0.000000e+00 : f32
    %72 = vector.broadcast %cst_37 : f32 to vector<8x128xf32>
    %73 = arith.cmpf ogt, %71, %72 : vector<8x128xf32>
    %cst_38 = arith.constant 1.000000e-01 : f32
    %74 = vector.broadcast %cst_38 : f32 to vector<8x128xf32>
    %75 = arith.mulf %74, %71 : vector<8x128xf32>
    %76 = arith.select %73, %71, %75 : vector<8x128xi1>, vector<8x128xf32>
    %c0_39 = arith.constant 0 : index
    %c0_40 = arith.constant 0 : index
    %77 = vector.load %arg11[%c0_39, %c0_40] : memref<1x128xf32, #tpu.memory_space<vmem>>, vector<1x128xf32>
    %c0_41 = arith.constant 0 : index
    %c0_42 = arith.constant 0 : index
    %78 = vector.load %arg12[%c0_41, %c0_42] : memref<1x128xf32, #tpu.memory_space<vmem>>, vector<1x128xf32>
    %cst_43 = arith.constant dense<0.000000e+00> : vector<128xf32>
    %79 = vector.multi_reduction <add>, %76, %cst_43 [0] : vector<8x128xf32> to vector<128xf32>
    %80 = vector.shape_cast %79 : vector<128xf32> to vector<1x128xf32>
    %cst_44 = arith.constant 8.000000e+00 : f32
    %81 = vector.broadcast %cst_44 : f32 to vector<1x128xf32>
    %82 = arith.divf %80, %81 : vector<1x128xf32>
    %83 = vector.broadcast %82 : vector<1x128xf32> to vector<8x128xf32>
    %84 = arith.subf %76, %83 : vector<8x128xf32>
    %85 = arith.mulf %84, %84 : vector<8x128xf32>
    %cst_45 = arith.constant dense<0.000000e+00> : vector<128xf32>
    %86 = vector.multi_reduction <add>, %85, %cst_45 [0] : vector<8x128xf32> to vector<128xf32>
    %87 = vector.shape_cast %86 : vector<128xf32> to vector<1x128xf32>
    %cst_46 = arith.constant 8.000000e+00 : f32
    %88 = vector.broadcast %cst_46 : f32 to vector<1x128xf32>
    %89 = arith.divf %87, %88 : vector<1x128xf32>
    %cst_47 = arith.constant 9.99999974E-6 : f32
    %90 = vector.broadcast %cst_47 : f32 to vector<1x128xf32>
    %91 = arith.addf %89, %90 : vector<1x128xf32>
    %92 = math.rsqrt %91 : vector<1x128xf32>
    %93 = vector.broadcast %92 : vector<1x128xf32> to vector<8x128xf32>
    %94 = arith.mulf %84, %93 : vector<8x128xf32>
    %95 = vector.broadcast %77 : vector<1x128xf32> to vector<8x128xf32>
    %96 = arith.mulf %94, %95 : vector<8x128xf32>
    %97 = vector.broadcast %78 : vector<1x128xf32> to vector<8x128xf32>
    %98 = arith.addf %96, %97 : vector<8x128xf32>
    %99 = arith.truncf %98 : vector<8x128xf32> to vector<8x128xbf16>
    %c0_48 = arith.constant 0 : index
    %c0_49 = arith.constant 0 : index
    %100 = vector.load %arg13[%c0_48, %c0_49] : memref<128x128xbf16, #tpu.memory_space<vmem>>, vector<128x128xbf16>
    %cst_50 = arith.constant dense<0.000000e+00> : vector<8x128xf32>
    %101 = tpu.matmul %99, %100, %cst_50 {dimension_numbers = #tpu.dot_dimension_numbers<[1], [0], [0], [1], [0, 0, 1, 1], [], []>} : vector<8x128xbf16>, vector<128x128xbf16>, vector<8x128xf32> -> vector<8x128xf32>
    %c0_51 = arith.constant 0 : index
    %c0_52 = arith.constant 0 : index
    %102 = vector.load %arg14[%c0_51, %c0_52] : memref<1x128xf32, #tpu.memory_space<vmem>>, vector<1x128xf32>
    %103 = vector.broadcast %102 : vector<1x128xf32> to vector<8x128xf32>
    %104 = arith.addf %101, %103 : vector<8x128xf32>
    %c0_53 = arith.constant 0 : index
    %c0_54 = arith.constant 0 : index
    %105 = vector.load %arg15[%c0_53, %c0_54] : memref<8x128xf32, #tpu.memory_space<vmem>>, vector<8x128xf32>
    tpu.vector_store %arg15[%c0_53, %c0_54], %104 {strides = array<i32>} : memref<8x128xf32, #tpu.memory_space<vmem>>, vector<8x128xf32>,
    return
  }
}

</mosaic_0001>

<bundles_post_ra>
// kernel: encoder_forward.1
= control target key start
LH: loop header
LB: loop body
LE: loop exit
PB: predicated region body
PF: predicated region fallthrough
CT: control target
= control target key end

     0   :  { %v4556_v1 = vmov 0   ;;  %vm213_vm0 = vcmask 261120   ;;  %v4557_v21 = vmov 0.0   ;;  %vm4558_vm1 = vmmov 0   ;;  %s5925_s1 = inlined_call_operand.vmem [shape: bf16[32,1152], index: 1, kind: input, shape index: {}]   ;;  %s5926_s0 = inlined_call_operand.vmem [shape: bf16[8,32], index: 0, kind: input, shape index: {}]   ;;  %s5927_s5 = inlined_call_operand.vmem [shape: bf16[1152,512], index: 5, kind: input, shape index: {}]   ;;  %s5928_s2 = inlined_call_operand.vmem [shape: f32[1,1152], index: 2, kind: input, shape index: {}]   ;;  %s5929_s3 = inlined_call_operand.vmem [shape: f32[1,1152], index: 3, kind: input, shape index: {}]   ;;  %s5930_s4 = inlined_call_operand.vmem [shape: f32[1,1152], index: 4, kind: input, shape index: {}]   ;;  %s5931_s9 = inlined_call_operand.vmem [shape: bf16[512,128], index: 9, kind: input, shape index: {}]   ;;  %s5932_s6 = inlined_call_operand.vmem [shape: f32[1,512], index: 6, kind: input, shape index: {}]   ;;  %s5933_s7 = inlined_call_operand.vmem [shape: f32[1,512], index: 7, kind: input, shape index: {}]   ;;  %s5934_s8 = inlined_call_operand.vmem [shape: f32[1,512], index: 8, kind: input, shape index: {}]   ;;  %s5935_s13 = inlined_call_operand.vmem [shape: bf16[128,128], index: 13, kind: input, shape index: {}]   ;;  %s5936_s10 = inlined_call_operand.vmem [shape: f32[1,128], index: 10, kind: input, shape index: {}]   ;;  %s5937_s11 = inlined_call_operand.vmem [shape: f32[1,128], index: 11, kind: input, shape index: {}]   ;;  %s5938_s12 = inlined_call_operand.vmem [shape: f32[1,128], index: 12, kind: input, shape index: {}]   ;;  %s5939_s14 = inlined_call_operand.vmem [shape: f32[1,128], index: 14, kind: input, shape index: {}]   ;;  %s5940_s15 = inlined_call_operand.vmem [shape: f32[8,128], index: 15, kind: output, shape index: {}]  }
   0x1   :  { %v4028_v0 = vld [vmem:[%s5925_s1 + $0x4] ss:$36 sps:$4 sm:$0xff]   ;;  %249 = vmatprep.mubr.bf16.mxu0 %v4556_v1  ;;  %372 = vmatprep.mubr.bf16.mxu1 %v4556_v1  ;;  %v4031_v3 = vld [vmem:[%s5925_s1 + $0x4c] ss:$36 sps:$4 sm:$0xff]   ;;  %v51_v6 = vld [vmem:[%s5926_s0] sm:$0xf] }
   0x2   :  { %v4030_v2 = vld [vmem:[%s5925_s1] ss:$36 sps:$4 sm:$0xff]   ;;  %217 = vmatprep.subr.bf16.mxu0 %v4028_v0  ;;  %v4033_v4 = vld [vmem:[%s5925_s1 + $0x48] ss:$36 sps:$4 sm:$0xff]   ;;  %v4039_v8 = vld [vmem:[%s5925_s1 + $0x54] ss:$36 sps:$4 sm:$0xff]  }
   0x3   :  { %218 = vmatpush1.bf16.msra.mxu0 %v4030_v2  ;;  %v4036_v5 = vld [vmem:[%s5925_s1 + $0xc] ss:$36 sps:$4 sm:$0xff]   ;;  %v4046_v9 = vld [vmem:[%s5925_s1 + $0x1c] ss:$36 sps:$4 sm:$0xff]   ;;  %v4049_v11 = vld [vmem:[%s5925_s1 + $0x64] ss:$36 sps:$4 sm:$0xff]  }
   0x4   :  { %219 = vmatprep.subr.bf16.mxu0 %v4031_v3  ;;  %v4034_v7 = vld [vmem:[%s5925_s1 + $0x8] ss:$36 sps:$4 sm:$0xff]   ;;  %v4048_v10 = vld [vmem:[%s5925_s1 + $0x18] ss:$36 sps:$4 sm:$0xff]   ;;  %v4037_v12 = vld [vmem:[%s5925_s1 + $0x50] ss:$36 sps:$4 sm:$0xff]   ;;  %340 = vmatprep.subr.bf16.mxu1 %v4046_v9 }
   0x5   :  { %v4042_v13 = vld [vmem:[%s5925_s1 + $0x14] ss:$36 sps:$4 sm:$0xff]   ;;  %341 = vmatpush1.bf16.msra.mxu1 %v4048_v10  ;;  %v4051_v14 = vld [vmem:[%s5925_s1 + $0x60] ss:$36 sps:$4 sm:$0xff]   ;;  %v4053_v22 = vld [vmem:[%s5925_s1 + $0x68] ss:$36 sps:$4 sm:$0xff]  }
   0x6   :  { %342 = vmatprep.subr.bf16.mxu1 %v4049_v11  ;;  %v4056_v15 = vld [vmem:[%s5927_s5 + $0x4] ss:$16 sps:$4 sm:$0xff]   ;;  %v4045_v17 = vld [vmem:[%s5925_s1 + $0x5c] ss:$36 sps:$4 sm:$0xff]   ;;  %v4057_v24 = vld [vmem:[%s5927_s5 + $0x8] ss:$16 sps:$4 sm:$0xff]  }
   0x7   :  { %220 = vmatpush1.bf16.msra.mxu0 %v4033_v4  ;;  %v4040_v16 = vld [vmem:[%s5925_s1 + $0x10] ss:$36 sps:$4 sm:$0xff]   ;;  %v4043_v19 = vld [vmem:[%s5925_s1 + $0x58] ss:$36 sps:$4 sm:$0xff]   ;;  %v4052_v20 = vld [vmem:[%s5925_s1 + $0x20] ss:$36 sps:$4 sm:$0xff]  }
   0x8   :  { %258 = vmatprep.subr.bf16.mxu0 %v4036_v5  ;;  %v4054_v18 = vld [vmem:[%s5927_s5] ss:$16 sps:$4 sm:$0xff]   ;;  %v4059_v23 = vld [vmem:[%s5927_s5 + $0xc] ss:$16 sps:$4 sm:$0xff]   ;;  %v4062_v25 = vld [vmem:[%s5927_s5 + $0x24] ss:$16 sps:$4 sm:$0xff]  }
   0x9   :  { %343 = vmatpush1.bf16.msra.mxu1 %v4051_v14  ;;  %v4065_v26 = vld [vmem:[%s5927_s5 + $0x2c] ss:$16 sps:$4 sm:$0xff]   ;;  %v4060_v27 = vld [vmem:[%s5927_s5 + $0x20] ss:$16 sps:$4 sm:$0xff]   ;;  %v4063_v28 = vld [vmem:[%s5927_s5 + $0x28] ss:$16 sps:$4 sm:$0xff]  }
   0xa   :  { %3566 = vmatmul.mubr.msk.bf16.vlgmr.msra.gmra.mrb[0].mxu0 %vm213_vm0, %v51_v6  ;;  %2495 = vmatprep.subr.bf16.mxu1 %v4056_v15  ;;  %v4068_v29 = vld [vmem:[%s5927_s5 + $0x44] ss:$16 sps:$4 sm:$0xff]   ;;  %v4071_v30 = vld [vmem:[%s5927_s5 + $0x4c] ss:$16 sps:$4 sm:$0xff]   ;;  %v4066_v31 = vld [vmem:[%s5927_s5 + $0x40] ss:$16 sps:$4 sm:$0xff]  }
   0xb   :  { %259 = vmatpush1.bf16.msra.mxu0 %v4034_v7  ;;  %290 = vmatprep.mubr.bf16.mxu0 %v4556_v1  ;;  %v4069_v32 = vld [vmem:[%s5927_s5 + $0x48] ss:$16 sps:$4 sm:$0xff]   ;;  %v4074_v33 = vld [vmem:[%s5927_s5 + $0x64] ss:$16 sps:$4 sm:$0xff]   ;;  %v4077_v34 = vld [vmem:[%s5927_s5 + $0x6c] ss:$16 sps:$4 sm:$0xff]  }
   0xc   :  { %260 = vmatprep.subr.bf16.mxu0 %v4039_v8  ;;  %3569 = vmatmul.mubr.msk.bf16.vlgmr.msra.gmra.mrb[0].mxu1 %vm213_vm0, %v51_v6  ;;  %v4072_v35 = vld [vmem:[%s5927_s5 + $0x60] ss:$16 sps:$4 sm:$0xff]   ;;  %v4075_v36 = vld [vmem:[%s5927_s5 + $0x68] ss:$16 sps:$4 sm:$0xff]   ;;  %v4080_v37 = vld [vmem:[%s5927_s5 + $0x84] ss:$16 sps:$4 sm:$0xff]  }
   0xd   :  { %2496 = vmatpush1.bf16.msra.mxu1 %v4054_v18  ;;  %v4083_v38 = vld [vmem:[%s5927_s5 + $0x8c] ss:$16 sps:$4 sm:$0xff]   ;;  %v4078_v39 = vld [vmem:[%s5927_s5 + $0x80] ss:$16 sps:$4 sm:$0xff]   ;;  %v4081_v40 = vld [vmem:[%s5927_s5 + $0x88] ss:$16 sps:$4 sm:$0xff]  }
   0xe   :  { %2497 = vmatprep.subr.bf16.mxu1 %v4062_v25  ;;  %v4086_v41 = vld [vmem:[%s5927_s5 + $0xa4] ss:$16 sps:$4 sm:$0xff]   ;;  %v4089_v42 = vld [vmem:[%s5927_s5 + $0xac] ss:$16 sps:$4 sm:$0xff]   ;;  %v4084_v43 = vld [vmem:[%s5927_s5 + $0xa0] ss:$16 sps:$4 sm:$0xff]   ;;  %v76_v25 = vlaneseq }
   0xf   :  { %261 = vmatpush1.bf16.msra.mxu0 %v4037_v12  ;;  %v4087_v44 = vld [vmem:[%s5927_s5 + $0xa8] ss:$16 sps:$4 sm:$0xff]   ;;  %v4092_v45 = vld [vmem:[%s5927_s5 + $0xc4] ss:$16 sps:$4 sm:$0xff]   ;;  %v4095_v46 = vld [vmem:[%s5927_s5 + $0xcc] ss:$16 sps:$4 sm:$0xff]  }
  0x10   :  { %299 = vmatprep.subr.bf16.mxu0 %v4042_v13  ;;  %v4090_v47 = vld [vmem:[%s5927_s5 + $0xc0] ss:$16 sps:$4 sm:$0xff]   ;;  %v4093_v48 = vld [vmem:[%s5927_s5 + $0xc8] ss:$16 sps:$4 sm:$0xff]   ;;  %v4098_v49 = vld [vmem:[%s5927_s5 + $0xe4] ss:$16 sps:$4 sm:$0xff]  }
  0x11   :  { %2498 = vmatpush1.bf16.msra.mxu1 %v4060_v27  ;;  %v4101_v50 = vld [vmem:[%s5927_s5 + $0xec] ss:$16 sps:$4 sm:$0xff]   ;;  %v4096_v51 = vld [vmem:[%s5927_s5 + $0xe0] ss:$16 sps:$4 sm:$0xff]   ;;  %v4099_v52 = vld [vmem:[%s5927_s5 + $0xe8] ss:$16 sps:$4 sm:$0xff]  }
  0x12   :  { %3567 = vmatmul.mubr.msk.bf16.vlgmr.msra.gmra.mrb[4].mxu0 %vm213_vm0, %v51_v6  ;;  %2499 = vmatprep.subr.bf16.mxu1 %v4068_v29  ;;  %v4104_v53 = vld [vmem:[%s5927_s5 + $0x104] ss:$16 sps:$4 sm:$0xff]   ;;  %v4107_v54 = vld [vmem:[%s5927_s5 + $0x10c] ss:$16 sps:$4 sm:$0xff]   ;;  %v4102_v55 = vld [vmem:[%s5927_s5 + $0x100] ss:$16 sps:$4 sm:$0xff]  }
  0x13   :  { %300 = vmatpush1.bf16.msra.mxu0 %v4040_v16  ;;  %331 = vmatprep.mubr.bf16.mxu0 %v4556_v1  ;;  %v4105_v56 = vld [vmem:[%s5927_s5 + $0x108] ss:$16 sps:$4 sm:$0xff]   ;;  %v4110_v57 = vld [vmem:[%s5927_s5 + $0x124] ss:$16 sps:$4 sm:$0xff]   ;;  %v4113_v58 = vld [vmem:[%s5927_s5 + $0x12c] ss:$16 sps:$4 sm:$0xff]  }
  0x14   :  { %301 = vmatprep.subr.bf16.mxu0 %v4045_v17  ;;  %v4108_v59 = vld [vmem:[%s5927_s5 + $0x120] ss:$16 sps:$4 sm:$0xff]   ;;  %v4111_v60 = vld [vmem:[%s5927_s5 + $0x128] ss:$16 sps:$4 sm:$0xff]   ;;  %v4116_v61 = vld [vmem:[%s5927_s5 + $0x144] ss:$16 sps:$4 sm:$0xff]  }
  0x15   :  { %2500 = vmatpush1.bf16.msra.mxu1 %v4066_v31  ;;  %v4119_v62 = vld [vmem:[%s5927_s5 + $0x14c] ss:$16 sps:$4 sm:$0xff]   ;;  %v4114_v63 = vld [vmem:[%s5927_s5 + $0x140] ss:$16 sps:$4 sm:$0xff]   ;;  %v4117_v0 = vld [vmem:[%s5927_s5 + $0x148] ss:$16 sps:$4 sm:$0xff]  }
  0x16   :  { %2501 = vmatprep.subr.bf16.mxu1 %v4074_v33  ;;  %v4122_v2 = vld [vmem:[%s5927_s5 + $0x164] ss:$16 sps:$4 sm:$0xff]   ;;  %v4125_v3 = vld [vmem:[%s5927_s5 + $0x16c] ss:$16 sps:$4 sm:$0xff]   ;;  %v4120_v4 = vld [vmem:[%s5927_s5 + $0x160] ss:$16 sps:$4 sm:$0xff]  }
  0x17   :  { %302 = vmatpush1.bf16.msra.mxu0 %v4043_v19  ;;  %v4123_v5 = vld [vmem:[%s5927_s5 + $0x168] ss:$16 sps:$4 sm:$0xff]   ;;  %v4131_v7 = vld [vmem:[%s5927_s5 + $0x18c] ss:$16 sps:$4 sm:$0xff]   ;;  %v4126_v8 = vld [vmem:[%s5927_s5 + $0x180] ss:$16 sps:$4 sm:$0xff]  }
  0x18   :  { %3961 = vmatprep.subr.bf16.mxu0 %v4557_v21  ;;  %v4129_v9 = vld [vmem:[%s5927_s5 + $0x188] ss:$16 sps:$4 sm:$0xff]   ;;  %v4134_v10 = vld [vmem:[%s5927_s5 + $0x1a4] ss:$16 sps:$4 sm:$0xff]   ;;  %v4137_v11 = vld [vmem:[%s5927_s5 + $0x1ac] ss:$16 sps:$4 sm:$0xff]  }
  0x19   :  { %2502 = vmatpush1.bf16.msra.mxu1 %v4072_v35  ;;  %v4132_v12 = vld [vmem:[%s5927_s5 + $0x1a0] ss:$16 sps:$4 sm:$0xff]   ;;  %v4135_v13 = vld [vmem:[%s5927_s5 + $0x1a8] ss:$16 sps:$4 sm:$0xff]   ;;  %v4140_v14 = vld [vmem:[%s5927_s5 + $0x1c4] ss:$16 sps:$4 sm:$0xff]  }
  0x1a   :  { %3568 = vmatmul.mubr.msk.bf16.vlgmr.msra.gmra.mrb[8].mxu0 %vm213_vm0, %v51_v6  ;;  %2503 = vmatprep.subr.bf16.mxu1 %v4080_v37  ;;  %v4143_v15 = vld [vmem:[%s5927_s5 + $0x1cc] ss:$16 sps:$4 sm:$0xff]   ;;  %v4138_v16 = vld [vmem:[%s5927_s5 + $0x1c0] ss:$16 sps:$4 sm:$0xff]   ;;  %v4141_v17 = vld [vmem:[%s5927_s5 + $0x1c8] ss:$16 sps:$4 sm:$0xff]  }
  0x1b   :  { %3962 = vmatpush3.bf16.msra.mxu0 %v4052_v20  ;;  %3965 = vmatprep.mubr.msk.bf16.mxu0 %vm4558_vm1, %v4557_v21  ;;  %v4146_v18 = vld [vmem:[%s5927_s5 + $0x1e4] ss:$16 sps:$4 sm:$0xff]   ;;  %v4149_v19 = vld [vmem:[%s5927_s5 + $0x1ec] ss:$16 sps:$4 sm:$0xff]   ;;  %v4144_v20 = vld [vmem:[%s5927_s5 + $0x1e0] ss:$16 sps:$4 sm:$0xff]  }
  0x1c   :  { %3963 = vmatprep.subr.bf16.mxu0 %v4557_v21 }
  0x1d   :  { %2504 = vmatpush1.bf16.msra.mxu1 %v4078_v39 }
  0x1e   :  { %2505 = vmatprep.subr.bf16.mxu1 %v4086_v41 }
  0x1f   :  { %3964 = vmatpush3.bf16.msra.mxu0 %v4053_v22  ;;  %v4147_v22 = vld [vmem:[%s5927_s5 + $0x1e8] ss:$16 sps:$4 sm:$0xff]  }
  0x20   :  { %2700 = vmatprep.subr.bf16.mxu0 %v4059_v23  ;;  %v4152_v23 = vld [vmem:[%s5927_s5 + $0x204] ss:$16 sps:$4 sm:$0xff]  }
  0x21   :  { %2506 = vmatpush1.bf16.msra.mxu1 %v4084_v43 }
  0x22   :  { %3966 = vmatmul.mubr.msk.bf16.vlgmr.msra.gmra.mrb[12].mxu0 %vm213_vm0, %v51_v6  ;;  %2507 = vmatprep.subr.bf16.mxu1 %v4092_v45  ;;  %v4128_v6 = vld [vmem:[%s5927_s5 + $0x184] ss:$16 sps:$4 sm:$0xff]  }
  0x23   :  { %2701 = vmatpush1.bf16.msra.mxu0 %v4057_v24  ;;  %v4155_v24 = vld [vmem:[%s5927_s5 + $0x20c] ss:$16 sps:$4 sm:$0xff]  }
  0x24   :  { %2702 = vmatprep.subr.bf16.mxu0 %v4065_v26  ;;  %v4907_v26 = vshrl.u32 %v76_v25, 7 }
  0x25   :  { %2508 = vmatpush1.bf16.msra.mxu1 %v4090_v47 }
  0x26   :  { %2509 = vmatprep.subr.bf16.mxu1 %v4098_v49  ;;  %v4910_v27 = vsub.s32 0, %v4907_v26  ;;  %v4918_v29 = vsub.s32 1, %v4907_v26  ;;  %v4925_v37 = vsub.s32 3, %v4907_v26 }
  0x27   :  { %2703 = vmatpush1.bf16.msra.mxu0 %v4063_v28  ;;  %v4915_v28 = vld [vmem:[%s5928_s2] sm:$0xff] }
  0x28   :  { %2704 = vmatprep.subr.bf16.mxu0 %v4071_v30  ;;  %v79_v30 = vrot.slane %v4915_v28, %v4910_v27  ;;  %v83_v31 = vrot.slane %v4915_v28, %v4918_v29 }
  0x29   :  { %2510 = vmatpush1.bf16.msra.mxu1 %v4096_v51 }
  0x2a   :  { %2511 = vmatprep.subr.bf16.mxu1 %v4104_v53 }
  0x2b   :  { %2705 = vmatpush1.bf16.msra.mxu0 %v4069_v32 }
  0x2c   :  { %2706 = vmatprep.subr.bf16.mxu0 %v4077_v34 }
  0x2d   :  { %2512 = vmatpush1.bf16.msra.mxu1 %v4102_v55 }
  0x2e   :  { %2513 = vmatprep.subr.bf16.mxu1 %v4110_v57 }
  0x2f   :  { %2707 = vmatpush1.bf16.msra.mxu0 %v4075_v36 }
  0x30   :  { %2708 = vmatprep.subr.bf16.mxu0 %v4083_v38 }
  0x31   :  { %2514 = vmatpush1.bf16.msra.mxu1 %v4108_v59 }
  0x32   :  { %2515 = vmatprep.subr.bf16.mxu1 %v4116_v61 }
  0x33   :  { %2709 = vmatpush1.bf16.msra.mxu0 %v4081_v40 }
  0x34   :  { %2710 = vmatprep.subr.bf16.mxu0 %v4089_v42 }
  0x35   :  { %2516 = vmatpush1.bf16.msra.mxu1 %v4114_v63 }
  0x36   :  { %2517 = vmatprep.subr.bf16.mxu1 %v4122_v2 }
  0x37   :  { %2711 = vmatpush1.bf16.msra.mxu0 %v4087_v44  ;;  %v91_v44 = vrot.slane %v4915_v28, %v4925_v37 }
  0x38   :  { %2712 = vmatprep.subr.bf16.mxu0 %v4095_v46 }
  0x39   :  { %2518 = vmatpush1.bf16.msra.mxu1 %v4120_v4 }
  0x3a   :  { %2519 = vmatprep.subr.bf16.mxu1 %v4128_v6 }
  0x3b   :  { %2713 = vmatpush1.bf16.msra.mxu0 %v4093_v48 }
  0x3c   :  { %2714 = vmatprep.subr.bf16.mxu0 %v4101_v50 }
  0x3d   :  { %2520 = vmatpush1.bf16.msra.mxu1 %v4126_v8 }
  0x3e   :  { %2521 = vmatprep.subr.bf16.mxu1 %v4134_v10 }
  0x3f   :  { %2715 = vmatpush1.bf16.msra.mxu0 %v4099_v52 }
  0x40   :  { %2716 = vmatprep.subr.bf16.mxu0 %v4107_v54  ;;  %v4930_v54 = vsub.s32 2, %v4907_v26 }
  0x41   :  { %2522 = vmatpush1.bf16.msra.mxu1 %v4132_v12 }
  0x42   :  { %2523 = vmatprep.subr.bf16.mxu1 %v4140_v14  ;;  %v87_v63 = vrot.slane %v4915_v28, %v4930_v54 }
  0x43   :  { %2717 = vmatpush1.bf16.msra.mxu0 %v4105_v56 }
  0x44   :  { %2718 = vmatprep.subr.bf16.mxu0 %v4113_v58  ;;  %v4933_v58 = vsub.s32 5, %v4907_v26 }
  0x45   :  { %2524 = vmatpush1.bf16.msra.mxu1 %v4138_v16 }
  0x46   :  { %2525 = vmatprep.subr.bf16.mxu1 %v4146_v18  ;;  %v99_v4 = vrot.slane %v4915_v28, %v4933_v58 }
  0x47   :  { %2719 = vmatpush1.bf16.msra.mxu0 %v4111_v60 }
  0x48   :  { %2720 = vmatprep.subr.bf16.mxu0 %v4119_v62 }
  0x49   :  { %2526 = vmatpush1.bf16.msra.mxu1 %v4144_v20 }
  0x4a   :  { %2536 = vmatprep.subr.bf16.mxu1 %v4152_v23 }
  0x4b   :  { %2721 = vmatpush1.bf16.msra.mxu0 %v4117_v0 }
  0x4c   :  { %2722 = vmatprep.subr.bf16.mxu0 %v4125_v3 }
  0x4f   :  { %2723 = vmatpush1.bf16.msra.mxu0 %v4123_v5 }
  0x50   :  { %2724 = vmatprep.subr.bf16.mxu0 %v4131_v7 }
  0x53   :  { %2725 = vmatpush1.bf16.msra.mxu0 %v4129_v9 }
  0x54   :  { %2726 = vmatprep.subr.bf16.mxu0 %v4137_v11 }
  0x57   :  { %2727 = vmatpush1.bf16.msra.mxu0 %v4135_v13 }
  0x58   :  { %2728 = vmatprep.subr.bf16.mxu0 %v4143_v15 }
  0x5b   :  { %2729 = vmatpush1.bf16.msra.mxu0 %v4141_v17 }
  0x5c   :  { %2730 = vmatprep.subr.bf16.mxu0 %v4149_v19 }
  0x5f   :  { %2731 = vmatpush1.bf16.msra.mxu0 %v4147_v22 }
  0x60   :  { %2741 = vmatprep.subr.bf16.mxu0 %v4155_v24 }
  0xdd   :  { %v251_v32 = vpop.f32.mrb[0].mxu0 }
  0xde   :  { %v252_v33 = vadd.f32 %v251_v32, %v79_v30  ;;  %v253_v34 = vpop.f32.mrb[1].mxu0 }
  0xdf   :  { %v254_v35 = vadd.f32 %v253_v34, %v83_v31  ;;  %v255_v36 = vpop.f32.mrb[2].mxu0  ;;  %v4941_v10 = vpop.f32.mrb[0].mxu1 }
  0xe0   :  { %vm421_vm2 = vcmp.gt.f32.partialorder %v252_v33, 0.0  ;;  %v430_v38 = vmul.f32 0.1, %v252_v33  ;;  %v256_v39 = vpop.f32.mrb[3].mxu0  ;;  %v4945_v17 = vpop.f32.mrb[1].mxu1 }
  0xe1   :  { %vm422_vm3 = vcmp.gt.f32.partialorder %v254_v35, 0.0  ;;  %v431_v40 = vmul.f32 0.1, %v254_v35  ;;  %v378_v31 = vpop.f32.mrb[2].mxu1 }
  0xe2   :  { %v439_v41 = vsel %vm421_vm2, %v252_v33, %v430_v38  ;;  %v379_v34 = vpop.f32.mrb[3].mxu1 }
  0xe3   :  { %v452_v42 = vrot.slane %v439_v41, 4  ;;  %v440_v43 = vsel %vm422_vm3, %v254_v35, %v431_v40 }
  0xe4   :  { %v458_v45 = vrot.slane %v440_v43, 4 }
  0xe5   :  { %v453_v46 = vadd.f32 %v452_v42, %v439_v41  ;;  %v292_v47 = vpop.f32.mrb[4].mxu0 }
  0xe6   :  { %v459_v48 = vadd.f32 %v458_v45, %v440_v43  ;;  %v294_v49 = vpop.f32.mrb[5].mxu0  ;;  %v293_v12 = vadd.f32 %v292_v47, %v87_v63 }
  0xe7   :  { %v454_v50 = vrot.slane %v453_v46, 2  ;;  %v295_v51 = vadd.f32 %v294_v49, %v91_v44  ;;  %v296_v52 = vpop.f32.mrb[6].mxu0 }
  0xe8   :  { %v460_v53 = vrot.slane %v459_v48, 2  ;;  %v297_v55 = vpop.f32.mrb[7].mxu0  ;;  %v432_v23 = vmul.f32 0.1, %v293_v12  ;;  %vm423_vm5 = vcmp.gt.f32.partialorder %v293_v12, 0.0 }
  0xe9   :  { %v455_v56 = vadd.f32 %v454_v50, %v453_v46  ;;  %vm424_vm4 = vcmp.gt.f32.partialorder %v295_v51, 0.0  ;;  %v433_v57 = vmul.f32 0.1, %v295_v51 }
  0xea   :  { %v461_v59 = vadd.f32 %v460_v53, %v459_v48  ;;  %v441_v38 = vsel %vm423_vm5, %v293_v12, %v432_v23  ;;  %v4971_v23 = vld [vmem:[%s5930_s4] sm:$0xff] }
  0xeb   :  { %v456_v60 = vrot.slane %v455_v56, 1  ;;  %v442_v61 = vsel %vm424_vm4, %v295_v51, %v433_v57  ;;  %v464_v45 = vrot.slane %v441_v38, 4  ;;  %v685_v34 = vrot.slane %v4971_v23, %v4910_v27 }
  0xec   :  { %v462_v62 = vrot.slane %v461_v59, 1  ;;  %v470_v0 = vrot.slane %v442_v61, 4 }
  0xed   :  { %v457_v2 = vadd.f32 %v456_v60, %v455_v56  ;;  %v4937_v3 = vpop.f32.mrb[8].mxu0  ;;  %v465_v53 = vadd.f32 %v464_v45, %v441_v38 }
  0xee   :  { %v463_v5 = vadd.f32 %v462_v62, %v461_v59  ;;  %v471_v6 = vadd.f32 %v470_v0, %v442_v61  ;;  %v335_v7 = vpop.f32.mrb[9].mxu0 }
  0xef   :  { %v507_v8 = vmul.f32 0.125, %v457_v2  ;;  %v337_v9 = vpop.f32.mrb[10].mxu0  ;;  %v336_v16 = vadd.f32 %v335_v7, %v99_v4  ;;  %v466_v2 = vrot.slane %v465_v53, 2 }
  0xf0   :  { %v508_v11 = vmul.f32 0.125, %v463_v5  ;;  %v472_v13 = vrot.slane %v471_v6, 2  ;;  %v338_v14 = vpop.f32.mrb[11].mxu0 }
  0xf1   :  { %v4943_v15 = vsub.f32 %v439_v41, %v507_v8  ;;  %v435_v30 = vmul.f32 0.1, %v336_v16  ;;  %vm426_vm6 = vcmp.gt.f32.partialorder %v336_v16, 0.0 }
  0xf2   :  { %v4947_v18 = vsub.f32 %v440_v43, %v508_v11  ;;  %v473_v19 = vadd.f32 %v472_v13, %v471_v6  ;;  %v467_v11 = vadd.f32 %v466_v2, %v465_v53  ;;  %v4158_v53 = vld [vmem:[%s5927_s5 + $0x224] ss:$16 sps:$4 sm:$0xff]  }
  0xf3   :  { %v525_v20 = vmul.f32 %v4943_v15, %v4943_v15  ;;  %v4953_v41 = vsel %vm426_vm6, %v336_v16, %v435_v30 }
  0xf4   :  { %v526_v22 = vmul.f32 %v4947_v18, %v4947_v18  ;;  %v474_v24 = vrot.slane %v473_v19, 1  ;;  %v482_v48 = vrot.slane %v4953_v41, 4  ;;  %v468_v16 = vrot.slane %v467_v11, 1 }
  0xf5   :  { %v534_v25 = vrot.slane %v525_v20, 4  ;;  %v4961_v59 = vpop.f32.mrb[12].mxu0 }
  0xf6   :  { %v540_v32 = vrot.slane %v526_v22, 4  ;;  %v475_v33 = vadd.f32 %v474_v24, %v473_v19  ;;  %v483_v57 = vadd.f32 %v482_v48, %v4953_v41  ;;  %v3967_v63 = vpop.f32.mrb[13].mxu0  ;;  %v4966_v19 = vld [vmem:[%s5929_s3] sm:$0xff]  ;;  %v469_v30 = vadd.f32 %v468_v16, %v467_v11 }
  0xf7   :  { %v535_v35 = vadd.f32 %v534_v25, %v525_v20  ;;  %v418_v4 = vpop.f32.mrb[14].mxu0  ;;  %v629_v24 = vrot.slane %v4966_v19, %v4910_v27  ;;  %v633_v31 = vrot.slane %v4966_v19, %v4918_v29  ;;  %v4167_v63 = vld [vmem:[%s5927_s5 + $0x24c] ss:$16 sps:$4 sm:$0xff]   ;;  %v4176_v16 = vld [vmem:[%s5927_s5 + $0x284] ss:$16 sps:$4 sm:$0xff]  }
  0xf8   :  { %v541_v36 = vadd.f32 %v540_v32, %v526_v22  ;;  %v510_v39 = vmul.f32 0.125, %v475_v33  ;;  %v484_v7 = vrot.slane %v483_v57, 2  ;;  %v3968_v8 = vpop.f32.mrb[15].mxu0 }
  0xf9   :  { %v536_v40 = vrot.slane %v535_v35, 2  ;;  %v4170_v8 = vld [vmem:[%s5927_s5 + $0x264] ss:$16 sps:$4 sm:$0xff]  }
  0xfa   :  { %v542_v42 = vrot.slane %v541_v36, 2  ;;  %v4955_v43 = vsub.f32 %v442_v61, %v510_v39  ;;  %v485_v13 = vadd.f32 %v484_v7, %v483_v57  ;;  %v689_v39 = vrot.slane %v4971_v23, %v4918_v29 }
  0xfb   :  { %v537_v44 = vadd.f32 %v536_v40, %v535_v35  ;;  %v697_v57 = vrot.slane %v4971_v23, %v4925_v37 }
  0xfc   :  { %v543_v46 = vadd.f32 %v542_v42, %v541_v36  ;;  %v528_v47 = vmul.f32 %v4955_v43, %v4955_v43  ;;  %v486_v22 = vrot.slane %v485_v13, 1  ;;  %v509_v42 = vmul.f32 0.125, %v469_v30  ;;  %v4177_v30 = vld [vmem:[%s5927_s5 + $0x288] ss:$16 sps:$4 sm:$0xff]  }
  0xfd   :  { %v538_v49 = vrot.slane %v537_v44, 1 }
  0xfe   :  { %v544_v50 = vrot.slane %v543_v46, 1  ;;  %v552_v51 = vrot.slane %v528_v47, 4  ;;  %v487_v35 = vadd.f32 %v486_v22, %v485_v13  ;;  %v4983_v48 = vsub.f32 %v441_v38, %v509_v42  ;;  %v4161_v38 = vld [vmem:[%s5927_s5 + $0x22c] ss:$16 sps:$4 sm:$0xff]   ;;  %v4168_v13 = vld [vmem:[%s5927_s5 + $0x260] ss:$16 sps:$4 sm:$0xff]  }
  0xff   :  { %v539_v52 = vadd.f32 %v538_v49, %v537_v44 }
 0x100   :  { %v545_v55 = vadd.f32 %v544_v50, %v543_v46  ;;  %v553_v56 = vadd.f32 %v552_v51, %v528_v47  ;;  %v512_v46 = vmul.f32 0.125, %v487_v35  ;;  %v641_v50 = vrot.slane %v4966_v19, %v4925_v37 }
 0x101   :  { %v588_v60 = vmul.f32 0.125, %v539_v52  ;;  %v5061_v35 = vsub.s32 7, %v4907_v26 }
 0x102   :  { %v589_v61 = vmul.f32 0.125, %v545_v55  ;;  %v554_v62 = vrot.slane %v553_v56, 2  ;;  %v5000_v55 = vsub.f32 %v4953_v41, %v512_v46  ;;  %v4159_v41 = vld [vmem:[%s5927_s5 + $0x228] ss:$16 sps:$4 sm:$0xff]   ;;  %v4191_v46 = vld [vmem:[%s5927_s5 + $0x2cc] ss:$16 sps:$4 sm:$0xff]  }
 0x103   :  { %v597_v0 = vadd.f32 1e-05, %v588_v60  ;;  %v527_v60 = vmul.f32 %v4983_v48, %v4983_v48 }
 0x104   :  { %v598_v5 = vadd.f32 1e-05, %v589_v61  ;;  %v555_v6 = vadd.f32 %v554_v62, %v553_v56  ;;  %v4156_v61 = vld [vmem:[%s5927_s5 + $0x220] ss:$16 sps:$4 sm:$0xff]  }
 0x105   :  { %4526 = vrsqrt.f32 %v597_v0  ;;  %v530_v0 = vmul.f32 %v5000_v55, %v5000_v55  ;;  %v546_v4 = vrot.slane %v527_v60, 4 }
 0x106   :  { %4528 = vrsqrt.f32 %v598_v5  ;;  %v556_v9 = vrot.slane %v555_v6, 1  ;;  %v4162_v5 = vld [vmem:[%s5927_s5 + $0x240] ss:$16 sps:$4 sm:$0xff]  }
 0x107   :  { %v564_v11 = vrot.slane %v530_v0, 4 }
 0x108   :  { %v557_v12 = vadd.f32 %v556_v9, %v555_v6  ;;  %v4165_v6 = vld [vmem:[%s5927_s5 + $0x248] ss:$16 sps:$4 sm:$0xff]   ;;  %v4173_v9 = vld [vmem:[%s5927_s5 + $0x26c] ss:$16 sps:$4 sm:$0xff]  }
 0x109   :  { %v565_v22 = vadd.f32 %v564_v11, %v530_v0  ;;  %v4201_v0 = vld [vmem:[%s5927_s5 + $0x308] ss:$16 sps:$4 sm:$0xff]  }
 0x10a   :  { %v591_v14 = vmul.f32 0.125, %v557_v12  ;;  %v547_v12 = vadd.f32 %v546_v4, %v527_v60 }
 0x10c   :  { %v600_v20 = vadd.f32 1e-05, %v591_v14  ;;  %v4171_v14 = vld [vmem:[%s5927_s5 + $0x268] ss:$16 sps:$4 sm:$0xff]  }
 0x10e   :  { %4530 = vrsqrt.f32 %v600_v20  ;;  %v4179_v20 = vld [vmem:[%s5927_s5 + $0x28c] ss:$16 sps:$4 sm:$0xff]  }
 0x10f   :  { %v4527_v25 = vpop.eup %4526 }
 0x110   :  { %v4529_v32 = vpop.eup %4528  ;;  %v615_v33 = vmul.f32 %v4527_v25, %v4943_v15  ;;  %v4150_v15 = vld [vmem:[%s5927_s5 + $0x200] ss:$16 sps:$4 sm:$0xff]  }
 0x111   :  { %v616_v36 = vmul.f32 %v4529_v32, %v4947_v18  ;;  %v4153_v18 = vld [vmem:[%s5927_s5 + $0x208] ss:$16 sps:$4 sm:$0xff]   ;;  %v4174_v25 = vld [vmem:[%s5927_s5 + $0x280] ss:$16 sps:$4 sm:$0xff]   ;;  %v4185_v32 = vld [vmem:[%s5927_s5 + $0x2ac] ss:$16 sps:$4 sm:$0xff]  }
 0x112   :  { %v671_v40 = vmul.f32 %v629_v24, %v615_v33  ;;  %v548_v24 = vrot.slane %v547_v12, 2  ;;  %v5058_v33 = vsub.s32 4, %v4907_v26 }
 0x113   :  { %v672_v44 = vmul.f32 %v633_v31, %v616_v36  ;;  %v4182_v31 = vld [vmem:[%s5927_s5 + $0x2a4] ss:$16 sps:$4 sm:$0xff]  }
 0x114   :  { %v727_v45 = vadd.f32 %v685_v34, %v671_v40  ;;  %v566_v34 = vrot.slane %v565_v22, 2  ;;  %v549_v36 = vadd.f32 %v548_v24, %v547_v12  ;;  %v4183_v40 = vld [vmem:[%s5927_s5 + $0x2a8] ss:$16 sps:$4 sm:$0xff]   ;;  %v95_v42 = vrot.slane %v4915_v28, %v5058_v33  ;;  %v4210_v24 = vld [vmem:[%s5927_s5 + $0x340] ss:$16 sps:$4 sm:$0xff]  }
 0x115   :  { %v728_v47 = vadd.f32 %v689_v39, %v672_v44  ;;  %v4180_v39 = vld [vmem:[%s5927_s5 + $0x2a0] ss:$16 sps:$4 sm:$0xff]  }
 0x116   :  { %v736_v52 = vpack.c.bf16 %v727_v45, %v727_v45  ;;  %v567_v44 = vadd.f32 %v566_v34, %v565_v22  ;;  %v4188_v45 = vld [vmem:[%s5927_s5 + $0x2c4] ss:$16 sps:$4 sm:$0xff]  }
 0x117   :  { %v737_v49 = vpack.c.bf16 %v728_v47, %v728_v47  ;;  %v107_v47 = vrot.slane %v4915_v28, %v5061_v35 }
 0x118   :  { %v4531_v51 = vpop.eup %4530 }
 0x119   :  { %2527 = vmatprep.mubr.bf16.mxu1 %v737_v49  ;;  %2732 = vmatprep.mubr.bf16.mxu0 %v737_v49  ;;  %v618_v56 = vmul.f32 %v4531_v51, %v4955_v43  ;;  %v4164_v43 = vld [vmem:[%s5927_s5 + $0x244] ss:$16 sps:$4 sm:$0xff]   ;;  %v550_v49 = vrot.slane %v549_v36, 1  ;;  %v568_v51 = vrot.slane %v567_v44, 1 }
 0x11a   :  { %2528 = vmatmul.mubr.bf16.vlgmr.msra.gmra.mrb[4].mxu1 %v736_v52  ;;  %2733 = vmatmul.mubr.bf16.vlgmr.msra.gmra.mrb[16].mxu0 %v736_v52  ;;  %v4194_v52 = vld [vmem:[%s5927_s5 + $0x2e4] ss:$16 sps:$4 sm:$0xff]  }
 0x11b   :  { %2537 = vmatpush1.bf16.msra.mxu1 %v4150_v15  ;;  %2742 = vmatpush1.bf16.msra.mxu0 %v4153_v18  ;;  %v674_v62 = vmul.f32 %v641_v50, %v618_v56  ;;  %v4186_v15 = vld [vmem:[%s5927_s5 + $0x2c0] ss:$16 sps:$4 sm:$0xff]   ;;  %v4189_v18 = vld [vmem:[%s5927_s5 + $0x2c8] ss:$16 sps:$4 sm:$0xff]   ;;  %v334_v50 = vadd.f32 %v4937_v3, %v95_v42  ;;  %v551_v56 = vadd.f32 %v550_v49, %v549_v36  ;;  %v4227_v42 = vld [vmem:[%s5927_s5 + $0x38c] ss:$16 sps:$4 sm:$0xff]  }
 0x11c   :  { %2538 = vmatprep.subr.bf16.mxu1 %v4158_v53  ;;  %2743 = vmatprep.subr.bf16.mxu0 %v4161_v38  ;;  %v4197_v53 = vld [vmem:[%s5927_s5 + $0x2ec] ss:$16 sps:$4 sm:$0xff]   ;;  %v377_v38 = vadd.f32 %v4945_v17, %v107_v47  ;;  %v4192_v3 = vld [vmem:[%s5927_s5 + $0x2e0] ss:$16 sps:$4 sm:$0xff]   ;;  %v4225_v47 = vld [vmem:[%s5927_s5 + $0x388] ss:$16 sps:$4 sm:$0xff]  }
 0x11d   :  { %v730_v2 = vadd.f32 %v697_v57, %v674_v62  ;;  %v4195_v57 = vld [vmem:[%s5927_s5 + $0x2e8] ss:$16 sps:$4 sm:$0xff]   ;;  %v434_v60 = vmul.f32 0.1, %v334_v50  ;;  %v4203_v17 = vld [vmem:[%s5927_s5 + $0x30c] ss:$16 sps:$4 sm:$0xff]  }
 0x11e   :  { %vm425_vm7 = vcmp.gt.f32.partialorder %v334_v50, 0.0  ;;  %v437_v62 = vmul.f32 0.1, %v377_v38  ;;  %vm428_vm8 = vcmp.gt.f32.partialorder %v377_v38, 0.0  ;;  %v4216_v36 = vld [vmem:[%s5927_s5 + $0x360] ss:$16 sps:$4 sm:$0xff]  }
 0x11f   :  { %2539 = vmatpush1.bf16.msra.mxu1 %v4156_v61  ;;  %2744 = vmatpush1.bf16.msra.mxu0 %v4159_v41  ;;  %v739_v7 = vpack.c.bf16 %v730_v2, %v730_v2  ;;  %v569_v61 = vadd.f32 %v568_v51, %v567_v44  ;;  %v4200_v41 = vld [vmem:[%s5927_s5 + $0x304] ss:$16 sps:$4 sm:$0xff]   ;;  %v5111_v2 = vsel %vm425_vm7, %v334_v50, %v434_v60 }
 0x120   :  { %2540 = vmatprep.subr.bf16.mxu1 %v4164_v43  ;;  %2745 = vmatprep.subr.bf16.mxu0 %v4167_v63  ;;  %v590_v43 = vmul.f32 0.125, %v551_v56  ;;  %v4198_v63 = vld [vmem:[%s5927_s5 + $0x300] ss:$16 sps:$4 sm:$0xff]   ;;  %v476_v12 = vrot.slane %v5111_v2, 4  ;;  %v4230_v49 = vld [vmem:[%s5927_s5 + $0x3a4] ss:$16 sps:$4 sm:$0xff]   ;;  %v637_v60 = vrot.slane %v4966_v19, %v4930_v54 }
 0x121   :  { %2568 = vmatprep.mubr.bf16.mxu1 %v739_v7  ;;  %2773 = vmatprep.mubr.bf16.mxu0 %v739_v7  ;;  %v593_v4 = vmul.f32 0.125, %v569_v61  ;;  %v5119_v7 = vsel %vm428_vm8, %v377_v38, %v437_v62  ;;  %v4231_v38 = vld [vmem:[%s5927_s5 + $0x3a8] ss:$16 sps:$4 sm:$0xff]   ;;  %v4234_v62 = vld [vmem:[%s5927_s5 + $0x3c0] ss:$16 sps:$4 sm:$0xff]  }
 0x122   :  { %v599_v11 = vadd.f32 1e-05, %v590_v43  ;;  %v477_v22 = vadd.f32 %v476_v12, %v5111_v2  ;;  %v4237_v43 = vld [vmem:[%s5927_s5 + $0x3c8] ss:$16 sps:$4 sm:$0xff]  }
 0x123   :  { %2541 = vmatpush1.bf16.msra.mxu1 %v4162_v5  ;;  %2746 = vmatpush1.bf16.msra.mxu0 %v4165_v6  ;;  %v4206_v5 = vld [vmem:[%s5927_s5 + $0x324] ss:$16 sps:$4 sm:$0xff]   ;;  %v4209_v6 = vld [vmem:[%s5927_s5 + $0x32c] ss:$16 sps:$4 sm:$0xff]   ;;  %v4243_v12 = vld [vmem:[%s5927_s5 + $0x3e8] ss:$16 sps:$4 sm:$0xff]  }
 0x124   :  { %2542 = vmatprep.subr.bf16.mxu1 %v4170_v8  ;;  %2747 = vmatprep.subr.bf16.mxu0 %v4173_v9  ;;  %v4204_v8 = vld [vmem:[%s5927_s5 + $0x320] ss:$16 sps:$4 sm:$0xff]   ;;  %v4207_v9 = vld [vmem:[%s5927_s5 + $0x328] ss:$16 sps:$4 sm:$0xff]   ;;  %4532 = vrsqrt.f32 %v599_v11  ;;  %v478_v34 = vrot.slane %v477_v22, 2 }
 0x125   :  { %v4240_v11 = vld [vmem:[%s5927_s5 + $0x3e0] ss:$16 sps:$4 sm:$0xff]  }
 0x127   :  { %2543 = vmatpush1.bf16.msra.mxu1 %v4168_v13  ;;  %2748 = vmatpush1.bf16.msra.mxu0 %v4171_v14  ;;  %v4212_v13 = vld [vmem:[%s5927_s5 + $0x344] ss:$16 sps:$4 sm:$0xff]   ;;  %v602_v14 = vadd.f32 1e-05, %v593_v4  ;;  %v693_v4 = vrot.slane %v4971_v23, %v4930_v54 }
 0x128   :  { %2544 = vmatprep.subr.bf16.mxu1 %v4176_v16  ;;  %2749 = vmatprep.subr.bf16.mxu0 %v4179_v20  ;;  %v4215_v16 = vld [vmem:[%s5927_s5 + $0x34c] ss:$16 sps:$4 sm:$0xff]   ;;  %v494_v20 = vrot.slane %v5119_v7, 4 }
 0x129   :  { %4534 = vrsqrt.f32 %v602_v14  ;;  %v4248_v14 = vld [vmem:[%s5927_s5 + $0x404] ss:$16 sps:$4 sm:$0xff]  }
 0x12b   :  { %2545 = vmatpush1.bf16.msra.mxu1 %v4174_v25  ;;  %2750 = vmatpush1.bf16.msra.mxu0 %v4177_v30  ;;  %v4213_v25 = vld [vmem:[%s5927_s5 + $0x348] ss:$16 sps:$4 sm:$0xff]   ;;  %v4218_v30 = vld [vmem:[%s5927_s5 + $0x364] ss:$16 sps:$4 sm:$0xff]  }
 0x12c   :  { %2546 = vmatprep.subr.bf16.mxu1 %v4182_v31  ;;  %2751 = vmatprep.subr.bf16.mxu0 %v4185_v32  ;;  %v4221_v31 = vld [vmem:[%s5927_s5 + $0x36c] ss:$16 sps:$4 sm:$0xff]   ;;  %v495_v32 = vadd.f32 %v494_v20, %v5119_v7 }
 0x12e   :  { %v496_v44 = vrot.slane %v495_v32, 2  ;;  %v4533_v50 = vpop.eup %4532 }
 0x12f   :  { %2547 = vmatpush1.bf16.msra.mxu1 %v4180_v39  ;;  %2752 = vmatpush1.bf16.msra.mxu0 %v4183_v40  ;;  %v4219_v39 = vld [vmem:[%s5927_s5 + $0x368] ss:$16 sps:$4 sm:$0xff]   ;;  %v4224_v40 = vld [vmem:[%s5927_s5 + $0x384] ss:$16 sps:$4 sm:$0xff]   ;;  %v617_v56 = vmul.f32 %v4533_v50, %v4983_v48 }
 0x130   :  { %2548 = vmatprep.subr.bf16.mxu1 %v4188_v45  ;;  %2753 = vmatprep.subr.bf16.mxu0 %v4191_v46  ;;  %v479_v45 = vadd.f32 %v478_v34, %v477_v22  ;;  %v4222_v46 = vld [vmem:[%s5927_s5 + $0x380] ss:$16 sps:$4 sm:$0xff]  }
 0x133   :  { %2549 = vmatpush1.bf16.msra.mxu1 %v4186_v15  ;;  %2754 = vmatpush1.bf16.msra.mxu0 %v4189_v18  ;;  %v4233_v15 = vld [vmem:[%s5927_s5 + $0x3ac] ss:$16 sps:$4 sm:$0xff]   ;;  %v497_v18 = vadd.f32 %v496_v44, %v495_v32  ;;  %v4535_v51 = vpop.eup %4534 }
 0x134   :  { %2550 = vmatprep.subr.bf16.mxu1 %v4194_v52  ;;  %2755 = vmatprep.subr.bf16.mxu0 %v4197_v53  ;;  %v480_v52 = vrot.slane %v479_v45, 1  ;;  %v4228_v53 = vld [vmem:[%s5927_s5 + $0x3a0] ss:$16 sps:$4 sm:$0xff]  }
 0x135   :  { %v498_v61 = vrot.slane %v497_v18, 1 }
 0x136   :  { %v481_v48 = vadd.f32 %v480_v52, %v479_v45  ;;  %v4267_v52 = vld [vmem:[%s5927_s5 + $0x468] ss:$16 sps:$4 sm:$0xff]  }
 0x137   :  { %2551 = vmatpush1.bf16.msra.mxu1 %v4192_v3  ;;  %2756 = vmatpush1.bf16.msra.mxu0 %v4195_v57  ;;  %v4236_v3 = vld [vmem:[%s5927_s5 + $0x3c4] ss:$16 sps:$4 sm:$0xff]   ;;  %v4239_v57 = vld [vmem:[%s5927_s5 + $0x3cc] ss:$16 sps:$4 sm:$0xff]  }
 0x138   :  { %2552 = vmatprep.subr.bf16.mxu1 %v4200_v41  ;;  %2757 = vmatprep.subr.bf16.mxu0 %v4203_v17  ;;  %v620_v41 = vmul.f32 %v4535_v51, %v5000_v55  ;;  %v649_v17 = vrot.slane %v4966_v19, %v4933_v58  ;;  %v4242_v55 = vld [vmem:[%s5927_s5 + $0x3e4] ss:$16 sps:$4 sm:$0xff]   ;;  %v4264_v51 = vld [vmem:[%s5927_s5 + $0x460] ss:$16 sps:$4 sm:$0xff]  }
 0x13b   :  { %2553 = vmatpush1.bf16.msra.mxu1 %v4198_v63  ;;  %2758 = vmatpush1.bf16.msra.mxu0 %v4201_v0  ;;  %v4245_v63 = vld [vmem:[%s5927_s5 + $0x3ec] ss:$16 sps:$4 sm:$0xff]   ;;  %v673_v0 = vmul.f32 %v637_v60, %v617_v56  ;;  %v4273_v60 = vld [vmem:[%s5927_s5 + $0x488] ss:$16 sps:$4 sm:$0xff]  }
 0x13c   :  { %2554 = vmatprep.subr.bf16.mxu1 %v4206_v5  ;;  %2759 = vmatprep.subr.bf16.mxu0 %v4209_v6  ;;  %v499_v5 = vadd.f32 %v498_v61, %v497_v18  ;;  %v676_v6 = vmul.f32 %v649_v17, %v620_v41  ;;  %v5284_v61 = vsub.s32 6, %v4907_v26  ;;  %v4278_v41 = vld [vmem:[%s5927_s5 + $0x4a4] ss:$16 sps:$4 sm:$0xff]   ;;  %v4281_v17 = vld [vmem:[%s5927_s5 + $0x4ac] ss:$16 sps:$4 sm:$0xff]  }
 0x13d   :  { %v4279_v26 = vld [vmem:[%s5927_s5 + $0x4a8] ss:$16 sps:$4 sm:$0xff]  }
 0x13f   :  { %2555 = vmatpush1.bf16.msra.mxu1 %v4204_v8  ;;  %2760 = vmatpush1.bf16.msra.mxu0 %v4207_v9  ;;  %v705_v8 = vrot.slane %v4971_v23, %v4933_v58  ;;  %v511_v9 = vmul.f32 0.125, %v481_v48  ;;  %v4251_v58 = vld [vmem:[%s5927_s5 + $0x40c] ss:$16 sps:$4 sm:$0xff]  }
 0x140   :  { %2556 = vmatprep.subr.bf16.mxu1 %v4212_v13  ;;  %2761 = vmatprep.subr.bf16.mxu0 %v4215_v16  ;;  %v729_v13 = vadd.f32 %v693_v4, %v673_v0  ;;  %v514_v16 = vmul.f32 0.125, %v499_v5  ;;  %v4284_v0 = vld [vmem:[%s5927_s5 + $0x4c4] ss:$16 sps:$4 sm:$0xff]   ;;  %v4287_v4 = vld [vmem:[%s5927_s5 + $0x4cc] ss:$16 sps:$4 sm:$0xff]  }
 0x141   :  { %v732_v20 = vadd.f32 %v705_v8, %v676_v6  ;;  %v5220_v22 = vsub.f32 %v5111_v2, %v511_v9  ;;  %v4257_v2 = vld [vmem:[%s5927_s5 + $0x42c] ss:$16 sps:$4 sm:$0xff]   ;;  %v4285_v8 = vld [vmem:[%s5927_s5 + $0x4c8] ss:$16 sps:$4 sm:$0xff]  }
 0x142   :  { %v5235_v32 = vsub.f32 %v5119_v7, %v514_v16  ;;  %v4260_v7 = vld [vmem:[%s5927_s5 + $0x444] ss:$16 sps:$4 sm:$0xff]  }
 0x143   :  { %2557 = vmatpush1.bf16.msra.mxu1 %v4210_v24  ;;  %2762 = vmatpush1.bf16.msra.mxu0 %v4213_v25  ;;  %v4246_v24 = vld [vmem:[%s5927_s5 + $0x400] ss:$16 sps:$4 sm:$0xff]   ;;  %v4249_v25 = vld [vmem:[%s5927_s5 + $0x408] ss:$16 sps:$4 sm:$0xff]   ;;  %v741_v34 = vpack.c.bf16 %v732_v20, %v732_v20  ;;  %v4296_v20 = vld [vmem:[%s5927_s5 + $0x504] ss:$16 sps:$4 sm:$0xff]  }
 0x144   :  { %2558 = vmatprep.subr.bf16.mxu1 %v4218_v30  ;;  %2763 = vmatprep.subr.bf16.mxu0 %v4221_v31  ;;  %v738_v30 = vpack.c.bf16 %v729_v13, %v729_v13  ;;  %v4254_v31 = vld [vmem:[%s5927_s5 + $0x424] ss:$16 sps:$4 sm:$0xff]   ;;  %v532_v44 = vmul.f32 %v5235_v32, %v5235_v32 }
 0x146   :  { %v576_v18 = vrot.slane %v532_v44, 4 }
 0x147   :  { %2559 = vmatpush1.bf16.msra.mxu1 %v4216_v36  ;;  %2764 = vmatpush1.bf16.msra.mxu0 %v4219_v39  ;;  %v529_v36 = vmul.f32 %v5220_v22, %v5220_v22  ;;  %v4252_v39 = vld [vmem:[%s5927_s5 + $0x420] ss:$16 sps:$4 sm:$0xff]  }
 0x148   :  { %2560 = vmatprep.subr.bf16.mxu1 %v4224_v40  ;;  %2765 = vmatprep.subr.bf16.mxu0 %v4227_v42  ;;  %v4255_v40 = vld [vmem:[%s5927_s5 + $0x428] ss:$16 sps:$4 sm:$0xff]   ;;  %v4263_v42 = vld [vmem:[%s5927_s5 + $0x44c] ss:$16 sps:$4 sm:$0xff]   ;;  %v577_v56 = vadd.f32 %v576_v18, %v532_v44 }
 0x149   :  { %v558_v45 = vrot.slane %v529_v36, 4  ;;  %v4303_v44 = vld [vmem:[%s5927_s5 + $0x528] ss:$16 sps:$4 sm:$0xff]  }
 0x14a   :  { %v578_v48 = vrot.slane %v577_v56, 2  ;;  %v4309_v18 = vld [vmem:[%s5927_s5 + $0x548] ss:$16 sps:$4 sm:$0xff]  }
 0x14b   :  { %2561 = vmatpush1.bf16.msra.mxu1 %v4222_v46  ;;  %2766 = vmatpush1.bf16.msra.mxu0 %v4225_v47  ;;  %v4258_v46 = vld [vmem:[%s5927_s5 + $0x440] ss:$16 sps:$4 sm:$0xff]   ;;  %v4261_v47 = vld [vmem:[%s5927_s5 + $0x448] ss:$16 sps:$4 sm:$0xff]   ;;  %v559_v50 = vadd.f32 %v558_v45, %v529_v36  ;;  %v4302_v36 = vld [vmem:[%s5927_s5 + $0x524] ss:$16 sps:$4 sm:$0xff]  }
 0x14c   :  { %2562 = vmatprep.subr.bf16.mxu1 %v4230_v49  ;;  %2767 = vmatprep.subr.bf16.mxu0 %v4233_v15  ;;  %v4266_v49 = vld [vmem:[%s5927_s5 + $0x464] ss:$16 sps:$4 sm:$0xff]   ;;  %v4269_v15 = vld [vmem:[%s5927_s5 + $0x46c] ss:$16 sps:$4 sm:$0xff]  }
 0x14f   :  { %2563 = vmatpush1.bf16.msra.mxu1 %v4228_v53  ;;  %2768 = vmatpush1.bf16.msra.mxu0 %v4231_v38  ;;  %v4272_v53 = vld [vmem:[%s5927_s5 + $0x484] ss:$16 sps:$4 sm:$0xff]   ;;  %v4275_v38 = vld [vmem:[%s5927_s5 + $0x48c] ss:$16 sps:$4 sm:$0xff]  }
 0x150   :  { %2564 = vmatprep.subr.bf16.mxu1 %v4236_v3  ;;  %2769 = vmatprep.subr.bf16.mxu0 %v4239_v57  ;;  %v560_v3 = vrot.slane %v559_v50, 2  ;;  %v4270_v57 = vld [vmem:[%s5927_s5 + $0x480] ss:$16 sps:$4 sm:$0xff]  }
 0x153   :  { %2565 = vmatpush1.bf16.msra.mxu1 %v4234_v62  ;;  %2770 = vmatpush1.bf16.msra.mxu0 %v4237_v43  ;;  %v561_v62 = vadd.f32 %v560_v3, %v559_v50  ;;  %v4276_v43 = vld [vmem:[%s5927_s5 + $0x4a0] ss:$16 sps:$4 sm:$0xff]   ;;  %v4314_v50 = vld [vmem:[%s5927_s5 + $0x564] ss:$16 sps:$4 sm:$0xff]   ;;  %v4323_v3 = vld [vmem:[%s5927_s5 + $0x58c] ss:$16 sps:$4 sm:$0xff]  }
 0x154   :  { %2566 = vmatprep.subr.bf16.mxu1 %v4242_v55  ;;  %2771 = vmatprep.subr.bf16.mxu0 %v4245_v63  ;;  %v103_v55 = vrot.slane %v4915_v28, %v5284_v61  ;;  %v579_v63 = vadd.f32 %v578_v48, %v577_v56  ;;  %v4282_v28 = vld [vmem:[%s5927_s5 + $0x4c0] ss:$16 sps:$4 sm:$0xff]   ;;  %v4320_v56 = vld [vmem:[%s5927_s5 + $0x584] ss:$16 sps:$4 sm:$0xff]   ;;  %v4329_v48 = vld [vmem:[%s5927_s5 + $0x5ac] ss:$16 sps:$4 sm:$0xff]  }
 0x155   :  { %v562_v5 = vrot.slane %v561_v62, 1 }
 0x156   :  { %v375_v6 = vadd.f32 %v4941_v10, %v103_v55  ;;  %v580_v9 = vrot.slane %v579_v63, 1  ;;  %v4324_v55 = vld [vmem:[%s5927_s5 + $0x5a0] ss:$16 sps:$4 sm:$0xff]  }
 0x157   :  { %2567 = vmatpush1.bf16.msra.mxu1 %v4240_v11  ;;  %2772 = vmatpush1.bf16.msra.mxu0 %v4243_v12  ;;  %v4290_v11 = vld [vmem:[%s5927_s5 + $0x4e4] ss:$16 sps:$4 sm:$0xff]   ;;  %v4293_v12 = vld [vmem:[%s5927_s5 + $0x4ec] ss:$16 sps:$4 sm:$0xff]   ;;  %v563_v10 = vadd.f32 %v562_v5, %v561_v62 }
 0x158   :  { %2577 = vmatprep.subr.bf16.mxu1 %v4248_v14  ;;  %2782 = vmatprep.subr.bf16.mxu0 %v4251_v58  ;;  %v436_v13 = vmul.f32 0.1, %v375_v6  ;;  %v4288_v14 = vld [vmem:[%s5927_s5 + $0x4e0] ss:$16 sps:$4 sm:$0xff]   ;;  %v4291_v58 = vld [vmem:[%s5927_s5 + $0x4e8] ss:$16 sps:$4 sm:$0xff]   ;;  %v581_v16 = vadd.f32 %v580_v9, %v579_v63 }
 0x159   :  { %vm427_vm9 = vcmp.gt.f32.partialorder %v375_v6, 0.0  ;;  %v4327_v63 = vld [vmem:[%s5927_s5 + $0x5a8] ss:$16 sps:$4 sm:$0xff]   ;;  %v4332_v5 = vld [vmem:[%s5927_s5 + $0x5c4] ss:$16 sps:$4 sm:$0xff]  }
 0x15a   :  { %2569 = vmatmul.mubr.bf16.vlgmr.msra.gmra.mrb[4].mxu1 %v738_v30  ;;  %2774 = vmatmul.mubr.bf16.vlgmr.msra.gmra.mrb[16].mxu0 %v738_v30  ;;  %v5331_v30 = vsel %vm427_vm9, %v375_v6, %v436_v13  ;;  %v4335_v6 = vld [vmem:[%s5927_s5 + $0x5cc] ss:$16 sps:$4 sm:$0xff]  }
 0x15b   :  { %2578 = vmatpush1.bf16.msra.mxu1 %v4246_v24  ;;  %2783 = vmatpush1.bf16.msra.mxu0 %v4249_v25  ;;  %v4299_v24 = vld [vmem:[%s5927_s5 + $0x50c] ss:$16 sps:$4 sm:$0xff]   ;;  %v592_v25 = vmul.f32 0.125, %v563_v10 }
 0x15c   :  { %2579 = vmatprep.subr.bf16.mxu1 %v4254_v31  ;;  %2784 = vmatprep.subr.bf16.mxu0 %v4257_v2  ;;  %v4294_v31 = vld [vmem:[%s5927_s5 + $0x500] ss:$16 sps:$4 sm:$0xff]   ;;  %v4297_v2 = vld [vmem:[%s5927_s5 + $0x508] ss:$16 sps:$4 sm:$0xff]  }
 0x15d   :  { %2609 = vmatprep.mubr.bf16.mxu1 %v741_v34  ;;  %2814 = vmatprep.mubr.bf16.mxu0 %v741_v34  ;;  %v595_v34 = vmul.f32 0.125, %v581_v16  ;;  %v713_v16 = vrot.slane %v4971_v23, %v5061_v35 }
 0x15f   :  { %2580 = vmatpush1.bf16.msra.mxu1 %v4252_v39  ;;  %2785 = vmatpush1.bf16.msra.mxu0 %v4255_v40  ;;  %v4305_v39 = vld [vmem:[%s5927_s5 + $0x52c] ss:$16 sps:$4 sm:$0xff]   ;;  %v488_v40 = vrot.slane %v5331_v30, 4  ;;  %v604_v45 = vadd.f32 1e-05, %v595_v34 }
 0x160   :  { %2581 = vmatprep.subr.bf16.mxu1 %v4260_v7  ;;  %2786 = vmatprep.subr.bf16.mxu0 %v4263_v42  ;;  %v601_v7 = vadd.f32 1e-05, %v592_v25  ;;  %v4300_v42 = vld [vmem:[%s5927_s5 + $0x520] ss:$16 sps:$4 sm:$0xff]  }
 0x161   :  { %v4342_v34 = vld [vmem:[%s5927_s5 + $0x600] ss:$16 sps:$4 sm:$0xff]  }
 0x162   :  { %4536 = vrsqrt.f32 %v601_v7  ;;  %v4353_v7 = vld [vmem:[%s5927_s5 + $0x62c] ss:$16 sps:$4 sm:$0xff]  }
 0x163   :  { %2582 = vmatpush1.bf16.msra.mxu1 %v4258_v46  ;;  %2787 = vmatpush1.bf16.msra.mxu0 %v4261_v47  ;;  %v4308_v46 = vld [vmem:[%s5927_s5 + $0x544] ss:$16 sps:$4 sm:$0xff]   ;;  %v4311_v47 = vld [vmem:[%s5927_s5 + $0x54c] ss:$16 sps:$4 sm:$0xff]   ;;  %4538 = vrsqrt.f32 %v604_v45 }
 0x164   :  { %2583 = vmatprep.subr.bf16.mxu1 %v4266_v49  ;;  %2788 = vmatprep.subr.bf16.mxu0 %v4269_v15  ;;  %v489_v49 = vadd.f32 %v488_v40, %v5331_v30  ;;  %v4306_v15 = vld [vmem:[%s5927_s5 + $0x540] ss:$16 sps:$4 sm:$0xff]  }
 0x167   :  { %2584 = vmatpush1.bf16.msra.mxu1 %v4264_v51  ;;  %2789 = vmatpush1.bf16.msra.mxu0 %v4267_v52  ;;  %v4317_v51 = vld [vmem:[%s5927_s5 + $0x56c] ss:$16 sps:$4 sm:$0xff]   ;;  %v490_v52 = vrot.slane %v489_v49, 2 }
 0x168   :  { %2585 = vmatprep.subr.bf16.mxu1 %v4272_v53  ;;  %2790 = vmatprep.subr.bf16.mxu0 %v4275_v38  ;;  %v4312_v53 = vld [vmem:[%s5927_s5 + $0x560] ss:$16 sps:$4 sm:$0xff]   ;;  %v4315_v38 = vld [vmem:[%s5927_s5 + $0x568] ss:$16 sps:$4 sm:$0xff]  }
 0x16b   :  { %2586 = vmatpush1.bf16.msra.mxu1 %v4270_v57  ;;  %2791 = vmatpush1.bf16.msra.mxu0 %v4273_v60  ;;  %v491_v57 = vadd.f32 %v490_v52, %v489_v49  ;;  %v4318_v60 = vld [vmem:[%s5927_s5 + $0x580] ss:$16 sps:$4 sm:$0xff]   ;;  %v4356_v49 = vld [vmem:[%s5927_s5 + $0x644] ss:$16 sps:$4 sm:$0xff]   ;;  %v4357_v52 = vld [vmem:[%s5927_s5 + $0x648] ss:$16 sps:$4 sm:$0xff]  }
 0x16c   :  { %2587 = vmatprep.subr.bf16.mxu1 %v4278_v41  ;;  %2792 = vmatprep.subr.bf16.mxu0 %v4281_v17  ;;  %v4321_v41 = vld [vmem:[%s5927_s5 + $0x588] ss:$16 sps:$4 sm:$0xff]   ;;  %v4326_v17 = vld [vmem:[%s5927_s5 + $0x5a4] ss:$16 sps:$4 sm:$0xff]   ;;  %v4537_v62 = vpop.eup %4536 }
 0x16f   :  { %2588 = vmatpush1.bf16.msra.mxu1 %v4276_v43  ;;  %2793 = vmatpush1.bf16.msra.mxu0 %v4279_v26  ;;  %v4539_v43 = vpop.eup %4538  ;;  %v492_v26 = vrot.slane %v491_v57, 1 }
 0x170   :  { %2589 = vmatprep.subr.bf16.mxu1 %v4284_v0  ;;  %2794 = vmatprep.subr.bf16.mxu0 %v4287_v4  ;;  %v619_v0 = vmul.f32 %v4537_v62, %v5220_v22  ;;  %v645_v4 = vrot.slane %v4966_v19, %v5058_v33  ;;  %v657_v22 = vrot.slane %v4966_v19, %v5061_v35  ;;  %v4341_v19 = vld [vmem:[%s5927_s5 + $0x5ec] ss:$16 sps:$4 sm:$0xff]  }
 0x171   :  { %v493_v9 = vadd.f32 %v492_v26, %v491_v57  ;;  %v4360_v57 = vld [vmem:[%s5927_s5 + $0x660] ss:$16 sps:$4 sm:$0xff]   ;;  %v4369_v26 = vld [vmem:[%s5927_s5 + $0x688] ss:$16 sps:$4 sm:$0xff]  }
 0x172   :  { %v675_v13 = vmul.f32 %v645_v4, %v619_v0 }
 0x173   :  { %2590 = vmatpush1.bf16.msra.mxu1 %v4282_v28  ;;  %2795 = vmatpush1.bf16.msra.mxu0 %v4285_v8  ;;  %v3547_v28 = vld [vmem:[%s5928_s2 + $0x8] ss:$0 sm:$0xff]  ;;  %v622_v8 = vmul.f32 %v4539_v43, %v5235_v32  ;;  %v4338_v32 = vld [vmem:[%s5927_s5 + $0x5e4] ss:$16 sps:$4 sm:$0xff]   ;;  %v4366_v43 = vld [vmem:[%s5927_s5 + $0x680] ss:$16 sps:$4 sm:$0xff]  }
 0x174   :  { %2591 = vmatprep.subr.bf16.mxu1 %v4290_v11  ;;  %2796 = vmatprep.subr.bf16.mxu0 %v4293_v12  ;;  %v4330_v11 = vld [vmem:[%s5927_s5 + $0x5c0] ss:$16 sps:$4 sm:$0xff]   ;;  %v4333_v12 = vld [vmem:[%s5927_s5 + $0x5c8] ss:$16 sps:$4 sm:$0xff]   ;;  %v416_v10 = vadd.f32 %v3547_v28, %v4961_v59  ;;  %v4380_v28 = vld [vmem:[%s5927_s5 + $0x6c4] ss:$16 sps:$4 sm:$0xff]  }
 0x175   :  { %v4336_v59 = vld [vmem:[%s5927_s5 + $0x5e0] ss:$16 sps:$4 sm:$0xff]  }
 0x176   :  { %v438_v25 = vmul.f32 0.1, %v416_v10  ;;  %vm429_vm10 = vcmp.gt.f32.partialorder %v416_v10, 0.0 }
 0x177   :  { %2592 = vmatpush1.bf16.msra.mxu1 %v4288_v14  ;;  %2797 = vmatpush1.bf16.msra.mxu0 %v4291_v58  ;;  %v701_v14 = vrot.slane %v4971_v23, %v5058_v33  ;;  %v678_v58 = vmul.f32 %v657_v22, %v622_v8  ;;  %v4344_v33 = vld [vmem:[%s5927_s5 + $0x604] ss:$16 sps:$4 sm:$0xff]   ;;  %v4347_v23 = vld [vmem:[%s5927_s5 + $0x60c] ss:$16 sps:$4 sm:$0xff]  }
 0x178   :  { %2593 = vmatprep.subr.bf16.mxu1 %v4296_v20  ;;  %2798 = vmatprep.subr.bf16.mxu0 %v4299_v24  ;;  %v513_v20 = vmul.f32 0.125, %v493_v9  ;;  %v4339_v24 = vld [vmem:[%s5927_s5 + $0x5e8] ss:$16 sps:$4 sm:$0xff]   ;;  %v4383_v8 = vld [vmem:[%s5927_s5 + $0x6cc] ss:$16 sps:$4 sm:$0xff]  }
 0x179   :  { %v734_v35 = vadd.f32 %v713_v16, %v678_v58  ;;  %v4387_v58 = vld [vmem:[%s5927_s5 + $0x6e8] ss:$16 sps:$4 sm:$0xff]   ;;  %v4392_v16 = vld [vmem:[%s5927_s5 + $0x704] ss:$16 sps:$4 sm:$0xff]  }
 0x17b   :  { %2594 = vmatpush1.bf16.msra.mxu1 %v4294_v31  ;;  %2799 = vmatpush1.bf16.msra.mxu0 %v4297_v2  ;;  %v731_v31 = vadd.f32 %v701_v14, %v675_v13  ;;  %v5446_v2 = vsub.f32 %v5331_v30, %v513_v20  ;;  %v4350_v30 = vld [vmem:[%s5927_s5 + $0x624] ss:$16 sps:$4 sm:$0xff]   ;;  %v4384_v14 = vld [vmem:[%s5927_s5 + $0x6e0] ss:$16 sps:$4 sm:$0xff]   ;;  %v4395_v20 = vld [vmem:[%s5927_s5 + $0x70c] ss:$16 sps:$4 sm:$0xff]  }
 0x17c   :  { %2595 = vmatprep.subr.bf16.mxu1 %v4302_v36  ;;  %2800 = vmatprep.subr.bf16.mxu0 %v4305_v39  ;;  %v4345_v36 = vld [vmem:[%s5927_s5 + $0x608] ss:$16 sps:$4 sm:$0xff]   ;;  %v5454_v39 = vsel %vm429_vm10, %v416_v10, %v438_v25  ;;  %v4386_v10 = vld [vmem:[%s5927_s5 + $0x6e4] ss:$16 sps:$4 sm:$0xff]   ;;  %v4390_v25 = vld [vmem:[%s5927_s5 + $0x700] ss:$16 sps:$4 sm:$0xff]  }
 0x17d   :  { %v740_v40 = vpack.c.bf16 %v731_v31, %v731_v31  ;;  %v500_v45 = vrot.slane %v5454_v39, 4  ;;  %v4393_v31 = vld [vmem:[%s5927_s5 + $0x708] ss:$16 sps:$4 sm:$0xff]  }
 0x17f   :  { %2596 = vmatpush1.bf16.msra.mxu1 %v4300_v42  ;;  %2801 = vmatpush1.bf16.msra.mxu0 %v4303_v44  ;;  %v743_v42 = vpack.c.bf16 %v734_v35, %v734_v35  ;;  %v531_v44 = vmul.f32 %v5446_v2, %v5446_v2 }
 0x180   :  { %2597 = vmatprep.subr.bf16.mxu1 %v4308_v46  ;;  %2802 = vmatprep.subr.bf16.mxu0 %v4311_v47  ;;  %v4348_v46 = vld [vmem:[%s5927_s5 + $0x620] ss:$16 sps:$4 sm:$0xff]   ;;  %v4351_v47 = vld [vmem:[%s5927_s5 + $0x628] ss:$16 sps:$4 sm:$0xff]  }
 0x183   :  { %2598 = vmatpush1.bf16.msra.mxu1 %v4306_v15  ;;  %2803 = vmatpush1.bf16.msra.mxu0 %v4309_v18  ;;  %v4359_v15 = vld [vmem:[%s5927_s5 + $0x64c] ss:$16 sps:$4 sm:$0xff]   ;;  %v570_v18 = vrot.slane %v531_v44, 4 }
 0x184   :  { %2599 = vmatprep.subr.bf16.mxu1 %v4314_v50  ;;  %2804 = vmatprep.subr.bf16.mxu0 %v4317_v51  ;;  %v501_v50 = vadd.f32 %v500_v45, %v5454_v39  ;;  %v4354_v51 = vld [vmem:[%s5927_s5 + $0x640] ss:$16 sps:$4 sm:$0xff]   ;;  %v4410_v45 = vld [vmem:[%s5927_s5 + $0x764] ss:$16 sps:$4 sm:$0xff]  }
 0x187   :  { %2600 = vmatpush1.bf16.msra.mxu1 %v4312_v53  ;;  %2805 = vmatpush1.bf16.msra.mxu0 %v4315_v38  ;;  %v4362_v53 = vld [vmem:[%s5927_s5 + $0x664] ss:$16 sps:$4 sm:$0xff]   ;;  %v4365_v38 = vld [vmem:[%s5927_s5 + $0x66c] ss:$16 sps:$4 sm:$0xff]  }
 0x188   :  { %2601 = vmatprep.subr.bf16.mxu1 %v4320_v56  ;;  %2806 = vmatprep.subr.bf16.mxu0 %v4323_v3  ;;  %v571_v56 = vadd.f32 %v570_v18, %v531_v44  ;;  %v502_v3 = vrot.slane %v501_v50, 2  ;;  %v4405_v44 = vld [vmem:[%s5927_s5 + $0x748] ss:$16 sps:$4 sm:$0xff]   ;;  %v4416_v18 = vld [vmem:[%s5927_s5 + $0x784] ss:$16 sps:$4 sm:$0xff]  }
 0x18a   :  { %v503_v62 = vadd.f32 %v502_v3, %v501_v50  ;;  %v4419_v50 = vld [vmem:[%s5927_s5 + $0x78c] ss:$16 sps:$4 sm:$0xff]  }
 0x18b   :  { %2602 = vmatpush1.bf16.msra.mxu1 %v4318_v60  ;;  %2807 = vmatpush1.bf16.msra.mxu0 %v4321_v41  ;;  %v4363_v60 = vld [vmem:[%s5927_s5 + $0x668] ss:$16 sps:$4 sm:$0xff]   ;;  %v4368_v41 = vld [vmem:[%s5927_s5 + $0x684] ss:$16 sps:$4 sm:$0xff]  }
 0x18c   :  { %2603 = vmatprep.subr.bf16.mxu1 %v4326_v17  ;;  %2808 = vmatprep.subr.bf16.mxu0 %v4329_v48  ;;  %v4371_v17 = vld [vmem:[%s5927_s5 + $0x68c] ss:$16 sps:$4 sm:$0xff]   ;;  %v572_v48 = vrot.slane %v571_v56, 2  ;;  %v504_v4 = vrot.slane %v503_v62, 1 }
 0x18e   :  { %v573_v0 = vadd.f32 %v572_v48, %v571_v56  ;;  %v505_v9 = vadd.f32 %v504_v4, %v503_v62  ;;  %v4425_v56 = vld [vmem:[%s5927_s5 + $0x7ac] ss:$16 sps:$4 sm:$0xff]   ;;  %v4554_v48 = vld [vmem:[%s5929_s3] sm:$0xff] }
 0x18f   :  { %2604 = vmatpush1.bf16.msra.mxu1 %v4324_v55  ;;  %2809 = vmatpush1.bf16.msra.mxu0 %v4327_v63  ;;  %v4374_v55 = vld [vmem:[%s5927_s5 + $0x6a4] ss:$16 sps:$4 sm:$0xff]   ;;  %v4377_v63 = vld [vmem:[%s5927_s5 + $0x6ac] ss:$16 sps:$4 sm:$0xff]   ;;  %v653_v62 = vrot.slane %v4554_v48, %v5284_v61 }
 0x190   :  { %2605 = vmatprep.subr.bf16.mxu1 %v4332_v5  ;;  %2810 = vmatprep.subr.bf16.mxu0 %v4335_v6  ;;  %v4372_v5 = vld [vmem:[%s5927_s5 + $0x6a0] ss:$16 sps:$4 sm:$0xff]   ;;  %v4375_v6 = vld [vmem:[%s5927_s5 + $0x6a8] ss:$16 sps:$4 sm:$0xff]   ;;  %v574_v22 = vrot.slane %v573_v0, 1  ;;  %v515_v13 = vmul.f32 0.125, %v505_v9 }
 0x191   :  { %v4437_v4 = vld [vmem:[%s5927_s5 + $0x7ec] ss:$16 sps:$4 sm:$0xff]   ;;  %v4435_v9 = vld [vmem:[%s5927_s5 + $0x7e8] ss:$16 sps:$4 sm:$0xff]   ;;  %v4487_v48 = vld [vmem:[%s5931_s9 + $0xc0] sm:$0xff]  }
 0x193   :  { %2606 = vmatpush1.bf16.msra.mxu1 %v4330_v11  ;;  %2811 = vmatpush1.bf16.msra.mxu0 %v4333_v12  ;;  %v4378_v11 = vld [vmem:[%s5927_s5 + $0x6c0] ss:$16 sps:$4 sm:$0xff]   ;;  %v4381_v12 = vld [vmem:[%s5927_s5 + $0x6c8] ss:$16 sps:$4 sm:$0xff]  }
 0x194   :  { %2607 = vmatprep.subr.bf16.mxu1 %v4338_v32  ;;  %2812 = vmatprep.subr.bf16.mxu0 %v4341_v19  ;;  %v4389_v32 = vld [vmem:[%s5927_s5 + $0x6ec] ss:$16 sps:$4 sm:$0xff]   ;;  %v575_v19 = vadd.f32 %v574_v22, %v573_v0  ;;  %v4434_v0 = vld [vmem:[%s5927_s5 + $0x7e4] ss:$16 sps:$4 sm:$0xff]   ;;  %v4432_v22 = vld [vmem:[%s5927_s5 + $0x7e0] ss:$16 sps:$4 sm:$0xff]  }
 0x197   :  { %2608 = vmatpush1.bf16.msra.mxu1 %v4336_v59  ;;  %2813 = vmatpush1.bf16.msra.mxu0 %v4339_v24  ;;  %v594_v59 = vmul.f32 0.125, %v575_v19  ;;  %v5551_v24 = vsub.f32 %v5454_v39, %v515_v13  ;;  %v4399_v39 = vld [vmem:[%s5927_s5 + $0x728] ss:$16 sps:$4 sm:$0xff]  }
 0x198   :  { %2618 = vmatprep.subr.bf16.mxu1 %v4344_v33  ;;  %2823 = vmatprep.subr.bf16.mxu0 %v4347_v23  ;;  %v4398_v33 = vld [vmem:[%s5927_s5 + $0x724] ss:$16 sps:$4 sm:$0xff]   ;;  %v4401_v23 = vld [vmem:[%s5927_s5 + $0x72c] ss:$16 sps:$4 sm:$0xff]   ;;  %v4441_v19 = vld [vmem:[%s5927_s5 + $0x808] ss:$16 sps:$4 sm:$0xff]  }
 0x199   :  { %v603_v35 = vadd.f32 1e-05, %v594_v59  ;;  %v4447_v59 = vld [vmem:[%s5927_s5 + $0x828] ss:$16 sps:$4 sm:$0xff]  }
 0x19a   :  { %2610 = vmatmul.mubr.bf16.vlgmr.msra.gmra.mrb[4].mxu1 %v740_v40  ;;  %2815 = vmatmul.mubr.bf16.vlgmr.msra.gmra.mrb[16].mxu0 %v740_v40  ;;  %v4404_v40 = vld [vmem:[%s5927_s5 + $0x744] ss:$16 sps:$4 sm:$0xff]  }
 0x19b   :  { %2619 = vmatpush1.bf16.msra.mxu1 %v4342_v34  ;;  %2824 = vmatpush1.bf16.msra.mxu0 %v4345_v36  ;;  %v533_v34 = vmul.f32 %v5551_v24, %v5551_v24  ;;  %v4396_v36 = vld [vmem:[%s5927_s5 + $0x720] ss:$16 sps:$4 sm:$0xff]   ;;  %4540 = vrsqrt.f32 %v603_v35  ;;  %v4458_v35 = vld [vmem:[%s5927_s5 + $0x864] ss:$16 sps:$4 sm:$0xff]  }
 0x19c   :  { %2620 = vmatprep.subr.bf16.mxu1 %v4350_v30  ;;  %2825 = vmatprep.subr.bf16.mxu0 %v4353_v7  ;;  %v4407_v30 = vld [vmem:[%s5927_s5 + $0x74c] ss:$16 sps:$4 sm:$0xff]  }
 0x19d   :  { %2650 = vmatprep.mubr.bf16.mxu1 %v743_v42  ;;  %2855 = vmatprep.mubr.bf16.mxu0 %v743_v42  ;;  %v582_v7 = vrot.slane %v533_v34, 4  ;;  %v4402_v42 = vld [vmem:[%s5927_s5 + $0x740] ss:$16 sps:$4 sm:$0xff]  }
 0x19f   :  { %2621 = vmatpush1.bf16.msra.mxu1 %v4348_v46  ;;  %2826 = vmatpush1.bf16.msra.mxu0 %v4351_v47  ;;  %v4413_v46 = vld [vmem:[%s5927_s5 + $0x76c] ss:$16 sps:$4 sm:$0xff]   ;;  %v583_v47 = vadd.f32 %v582_v7, %v533_v34  ;;  %v4456_v34 = vld [vmem:[%s5927_s5 + $0x860] ss:$16 sps:$4 sm:$0xff]   ;;  %v4465_v7 = vld [vmem:[%s5927_s5 + $0x888] ss:$16 sps:$4 sm:$0xff]  }
 0x1a0   :  { %2622 = vmatprep.subr.bf16.mxu1 %v4356_v49  ;;  %2827 = vmatprep.subr.bf16.mxu0 %v4359_v15  ;;  %v4408_v49 = vld [vmem:[%s5927_s5 + $0x760] ss:$16 sps:$4 sm:$0xff]   ;;  %v4411_v15 = vld [vmem:[%s5927_s5 + $0x768] ss:$16 sps:$4 sm:$0xff]  }
 0x1a3   :  { %2623 = vmatpush1.bf16.msra.mxu1 %v4354_v51  ;;  %2828 = vmatpush1.bf16.msra.mxu0 %v4357_v52  ;;  %v584_v51 = vrot.slane %v583_v47, 2  ;;  %v4414_v52 = vld [vmem:[%s5927_s5 + $0x780] ss:$16 sps:$4 sm:$0xff]  }
 0x1a4   :  { %2624 = vmatprep.subr.bf16.mxu1 %v4362_v53  ;;  %2829 = vmatprep.subr.bf16.mxu0 %v4365_v38  ;;  %v4417_v53 = vld [vmem:[%s5927_s5 + $0x788] ss:$16 sps:$4 sm:$0xff]   ;;  %v4422_v38 = vld [vmem:[%s5927_s5 + $0x7a4] ss:$16 sps:$4 sm:$0xff]  }
 0x1a5   :  { %v4541_v3 = vpop.eup %4540 }
 0x1a7   :  { %2625 = vmatpush1.bf16.msra.mxu1 %v4360_v57  ;;  %2830 = vmatpush1.bf16.msra.mxu0 %v4363_v60  ;;  %v585_v57 = vadd.f32 %v584_v51, %v583_v47  ;;  %v4420_v60 = vld [vmem:[%s5927_s5 + $0x7a0] ss:$16 sps:$4 sm:$0xff]   ;;  %v4471_v47 = vld [vmem:[%s5927_s5 + $0x8a8] ss:$16 sps:$4 sm:$0xff]  }
 0x1a8   :  { %2626 = vmatprep.subr.bf16.mxu1 %v4368_v41  ;;  %2831 = vmatprep.subr.bf16.mxu0 %v4371_v17  ;;  %v4423_v41 = vld [vmem:[%s5927_s5 + $0x7a8] ss:$16 sps:$4 sm:$0xff]   ;;  %v621_v17 = vmul.f32 %v4541_v3, %v5446_v2  ;;  %v4426_v2 = vld [vmem:[%s5927_s5 + $0x7c0] ss:$16 sps:$4 sm:$0xff]  }
 0x1a9   :  { %v4477_v51 = vld [vmem:[%s5927_s5 + $0x8c8] ss:$16 sps:$4 sm:$0xff]   ;;  %v4480_v3 = vld [vmem:[%s5927_s5 + $0x8e0] ss:$16 sps:$4 sm:$0xff]  }
 0x1ab   :  { %2627 = vmatpush1.bf16.msra.mxu1 %v4366_v43  ;;  %2832 = vmatpush1.bf16.msra.mxu0 %v4369_v26  ;;  %v4428_v43 = vld [vmem:[%s5927_s5 + $0x7c4] ss:$16 sps:$4 sm:$0xff]   ;;  %v4431_v26 = vld [vmem:[%s5927_s5 + $0x7cc] ss:$16 sps:$4 sm:$0xff]  }
 0x1ac   :  { %2628 = vmatprep.subr.bf16.mxu1 %v4374_v55  ;;  %2833 = vmatprep.subr.bf16.mxu0 %v4377_v63  ;;  %v586_v55 = vrot.slane %v585_v57, 1  ;;  %v4429_v63 = vld [vmem:[%s5927_s5 + $0x7c8] ss:$16 sps:$4 sm:$0xff]  }
 0x1af   :  { %2629 = vmatpush1.bf16.msra.mxu1 %v4372_v5  ;;  %2834 = vmatpush1.bf16.msra.mxu0 %v4375_v6  ;;  %v677_v5 = vmul.f32 %v653_v62, %v621_v17  ;;  %v4555_v6 = vld [vmem:[%s5930_s4] sm:$0xff] }
 0x1b0   :  { %2630 = vmatprep.subr.bf16.mxu1 %v4380_v28  ;;  %2835 = vmatprep.subr.bf16.mxu0 %v4383_v8  ;;  %v709_v28 = vrot.slane %v4555_v6, %v5284_v61  ;;  %v587_v8 = vadd.f32 %v586_v55, %v585_v57  ;;  %v4443_v61 = vld [vmem:[%s5927_s5 + $0x80c] ss:$16 sps:$4 sm:$0xff]   ;;  %v4483_v57 = vld [vmem:[%s5927_s5 + $0x8e8] ss:$16 sps:$4 sm:$0xff]   ;;  %v4486_v17 = vld [vmem:[%s5931_s9 + $0x40] sm:$0xff]  }
 0x1b1   :  { %v4488_v62 = vld [vmem:[%s5931_s9] sm:$0xff]   ;;  %v4491_v55 = vld [vmem:[%s5931_s9 + $0xc8] sm:$0xff]   ;;  %v4497_v6 = vld [vmem:[%s5931_s9 + $0x90] sm:$0xff]  }
 0x1b3   :  { %2631 = vmatpush1.bf16.msra.mxu1 %v4378_v11  ;;  %2836 = vmatpush1.bf16.msra.mxu0 %v4381_v12  ;;  %v733_v11 = vadd.f32 %v709_v28, %v677_v5  ;;  %v4440_v12 = vld [vmem:[%s5927_s5 + $0x804] ss:$16 sps:$4 sm:$0xff]   ;;  %v4498_v28 = vld [vmem:[%s5931_s9 + $0x58] sm:$0xff]  }
 0x1b4   :  { %2632 = vmatprep.subr.bf16.mxu1 %v4386_v10  ;;  %2837 = vmatprep.subr.bf16.mxu0 %v4389_v32  ;;  %v596_v10 = vmul.f32 0.125, %v587_v8  ;;  %v4438_v32 = vld [vmem:[%s5927_s5 + $0x800] ss:$16 sps:$4 sm:$0xff]   ;;  %v4499_v8 = vld [vmem:[%s5931_s9 + $0xd8] sm:$0xff]  }
 0x1b5   :  { %v742_v13 = vpack.c.bf16 %v733_v11, %v733_v11  ;;  %v4496_v5 = vld [vmem:[%s5931_s9 + $0x10] sm:$0xff]   ;;  %v4502_v11 = vld [vmem:[%s5931_s9 + $0x60] sm:$0xff]  }
 0x1b7   :  { %2633 = vmatpush1.bf16.msra.mxu1 %v4384_v14  ;;  %2838 = vmatpush1.bf16.msra.mxu0 %v4387_v58  ;;  %v4446_v14 = vld [vmem:[%s5927_s5 + $0x824] ss:$16 sps:$4 sm:$0xff]   ;;  %v4449_v58 = vld [vmem:[%s5927_s5 + $0x82c] ss:$16 sps:$4 sm:$0xff]  }
 0x1b8   :  { %2634 = vmatprep.subr.bf16.mxu1 %v4392_v16  ;;  %2839 = vmatprep.subr.bf16.mxu0 %v4395_v20  ;;  %v605_v16 = vadd.f32 1e-05, %v596_v10  ;;  %v4444_v20 = vld [vmem:[%s5927_s5 + $0x820] ss:$16 sps:$4 sm:$0xff]  }
 0x1b9   :  { %v4505_v10 = vld [vmem:[%s5931_s9 + $0xa0] sm:$0xff]  }
 0x1ba   :  { %4542 = vrsqrt.f32 %v605_v16  ;;  %v4511_v16 = vld [vmem:[%s5931_s9 + $0xf0] sm:$0xff]  }
 0x1bb   :  { %2635 = vmatpush1.bf16.msra.mxu1 %v4390_v25  ;;  %2840 = vmatpush1.bf16.msra.mxu0 %v4393_v31  ;;  %v4452_v25 = vld [vmem:[%s5927_s5 + $0x844] ss:$16 sps:$4 sm:$0xff]   ;;  %v4455_v31 = vld [vmem:[%s5927_s5 + $0x84c] ss:$16 sps:$4 sm:$0xff]  }
 0x1bc   :  { %2636 = vmatprep.subr.bf16.mxu1 %v4398_v33  ;;  %2841 = vmatprep.subr.bf16.mxu0 %v4401_v23  ;;  %v4450_v33 = vld [vmem:[%s5927_s5 + $0x840] ss:$16 sps:$4 sm:$0xff]   ;;  %v4453_v23 = vld [vmem:[%s5927_s5 + $0x848] ss:$16 sps:$4 sm:$0xff]  }
 0x1bf   :  { %2637 = vmatpush1.bf16.msra.mxu1 %v4396_v36  ;;  %2842 = vmatpush1.bf16.msra.mxu0 %v4399_v39  ;;  %v4459_v36 = vld [vmem:[%s5927_s5 + $0x868] ss:$16 sps:$4 sm:$0xff]   ;;  %v4464_v39 = vld [vmem:[%s5927_s5 + $0x884] ss:$16 sps:$4 sm:$0xff]  }
 0x1c0   :  { %2638 = vmatprep.subr.bf16.mxu1 %v4404_v40  ;;  %2843 = vmatprep.subr.bf16.mxu0 %v4407_v30  ;;  %v4467_v40 = vld [vmem:[%s5927_s5 + $0x88c] ss:$16 sps:$4 sm:$0xff]   ;;  %v4462_v30 = vld [vmem:[%s5927_s5 + $0x880] ss:$16 sps:$4 sm:$0xff]  }
 0x1c3   :  { %2639 = vmatpush1.bf16.msra.mxu1 %v4402_v42  ;;  %2844 = vmatpush1.bf16.msra.mxu0 %v4405_v44  ;;  %v4470_v42 = vld [vmem:[%s5927_s5 + $0x8a4] ss:$16 sps:$4 sm:$0xff]   ;;  %v4473_v44 = vld [vmem:[%s5927_s5 + $0x8ac] ss:$16 sps:$4 sm:$0xff]  }
 0x1c4   :  { %2640 = vmatprep.subr.bf16.mxu1 %v4410_v45  ;;  %2845 = vmatprep.subr.bf16.mxu0 %v4413_v46  ;;  %v4543_v45 = vpop.eup %4542  ;;  %v4468_v46 = vld [vmem:[%s5927_s5 + $0x8a0] ss:$16 sps:$4 sm:$0xff]  }
 0x1c7   :  { %2641 = vmatpush1.bf16.msra.mxu1 %v4408_v49  ;;  %2846 = vmatpush1.bf16.msra.mxu0 %v4411_v15  ;;  %v623_v49 = vmul.f32 %v4543_v45, %v5551_v24  ;;  %v4476_v15 = vld [vmem:[%s5927_s5 + $0x8c4] ss:$16 sps:$4 sm:$0xff]   ;;  %v4474_v24 = vld [vmem:[%s5927_s5 + $0x8c0] ss:$16 sps:$4 sm:$0xff]  }
 0x1c8   :  { %2642 = vmatprep.subr.bf16.mxu1 %v4416_v18  ;;  %2847 = vmatprep.subr.bf16.mxu0 %v4419_v50  ;;  %v4479_v18 = vld [vmem:[%s5927_s5 + $0x8cc] ss:$16 sps:$4 sm:$0xff]   ;;  %v3571_v50 = vld [vmem:[%s5929_s3 + $0x8] ss:$0 sm:$0xff] }
 0x1cb   :  { %2643 = vmatpush1.bf16.msra.mxu1 %v4414_v52  ;;  %2848 = vmatpush1.bf16.msra.mxu0 %v4417_v53  ;;  %v4482_v52 = vld [vmem:[%s5927_s5 + $0x8e4] ss:$16 sps:$4 sm:$0xff]   ;;  %v4485_v53 = vld [vmem:[%s5927_s5 + $0x8ec] ss:$16 sps:$4 sm:$0xff]  }
 0x1cc   :  { %2644 = vmatprep.subr.bf16.mxu1 %v4422_v38  ;;  %2849 = vmatprep.subr.bf16.mxu0 %v4425_v56  ;;  %v679_v38 = vmul.f32 %v3571_v50, %v623_v49  ;;  %v3572_v56 = vld [vmem:[%s5930_s4 + $0x8] ss:$0 sm:$0xff] }
 0x1cf   :  { %2645 = vmatpush1.bf16.msra.mxu1 %v4420_v60  ;;  %2850 = vmatpush1.bf16.msra.mxu0 %v4423_v41  ;;  %v735_v60 = vadd.f32 %v3572_v56, %v679_v38 }
 0x1d0   :  { %2646 = vmatprep.subr.bf16.mxu1 %v4428_v43  ;;  %2851 = vmatprep.subr.bf16.mxu0 %v4431_v26  ;;  %v4489_v43 = vld [vmem:[%s5931_s9 + $0x80] sm:$0xff]   ;;  %v4490_v26 = vld [vmem:[%s5931_s9 + $0x48] sm:$0xff]  }
 0x1d1   :  { %v744_v41 = vpack.c.bf16 %v735_v60, %v735_v60 }
 0x1d3   :  { %2647 = vmatpush1.bf16.msra.mxu1 %v4426_v2  ;;  %2852 = vmatpush1.bf16.msra.mxu0 %v4429_v63  ;;  %v4492_v2 = vld [vmem:[%s5931_s9 + $0x8] sm:$0xff]  }
 0x1d4   :  { %2648 = vmatprep.subr.bf16.mxu1 %v4434_v0  ;;  %2853 = vmatprep.subr.bf16.mxu0 %v4437_v4  ;;  %v4493_v63 = vld [vmem:[%s5931_s9 + $0x88] sm:$0xff]   ;;  %v4494_v0 = vld [vmem:[%s5931_s9 + $0x50] sm:$0xff]  }
 0x1d5   :  { %v4495_v4 = vld [vmem:[%s5931_s9 + $0xd0] sm:$0xff]  }
 0x1d7   :  { %2649 = vmatpush1.bf16.msra.mxu1 %v4432_v22  ;;  %2854 = vmatpush1.bf16.msra.mxu0 %v4435_v9  ;;  %v4500_v22 = vld [vmem:[%s5931_s9 + $0x18] sm:$0xff]  }
 0x1d8   :  { %2659 = vmatprep.subr.bf16.mxu1 %v4440_v12  ;;  %2864 = vmatprep.subr.bf16.mxu0 %v4443_v61  ;;  %v4501_v9 = vld [vmem:[%s5931_s9 + $0x98] sm:$0xff]   ;;  %v4503_v12 = vld [vmem:[%s5931_s9 + $0xe0] sm:$0xff]  }
 0x1d9   :  { %v4504_v61 = vld [vmem:[%s5931_s9 + $0x20] sm:$0xff]  }
 0x1da   :  { %2651 = vmatmul.mubr.bf16.vlgmr.msra.gmra.mrb[4].mxu1 %v742_v13  ;;  %2856 = vmatmul.mubr.bf16.vlgmr.msra.gmra.mrb[16].mxu0 %v742_v13  ;;  %v4508_v13 = vld [vmem:[%s5931_s9 + $0x28] sm:$0xff]  }
 0x1db   :  { %2660 = vmatpush1.bf16.msra.mxu1 %v4438_v32  ;;  %2865 = vmatpush1.bf16.msra.mxu0 %v4441_v19  ;;  %v4506_v32 = vld [vmem:[%s5931_s9 + $0x68] sm:$0xff]  }
 0x1dc   :  { %2661 = vmatprep.subr.bf16.mxu1 %v4446_v14  ;;  %2866 = vmatprep.subr.bf16.mxu0 %v4449_v58  ;;  %v4507_v19 = vld [vmem:[%s5931_s9 + $0xe8] sm:$0xff]   ;;  %v4510_v58 = vld [vmem:[%s5931_s9 + $0x70] sm:$0xff]  }
 0x1dd   :  { %2691 = vmatprep.mubr.bf16.mxu1 %v4556_v1  ;;  %2896 = vmatprep.mubr.bf16.mxu0 %v4556_v1  ;;  %v4461_v1 = vld [vmem:[%s5927_s5 + $0x86c] ss:$16 sps:$4 sm:$0xff]  }
 0x1de   :  { %v4509_v14 = vld [vmem:[%s5931_s9 + $0xa8] sm:$0xff]  }
 0x1df   :  { %2662 = vmatpush1.bf16.msra.mxu1 %v4444_v20  ;;  %2867 = vmatpush1.bf16.msra.mxu0 %v4447_v59  ;;  %v4512_v20 = vld [vmem:[%s5931_s9 + $0x30] sm:$0xff]  }
 0x1e0   :  { %2663 = vmatprep.subr.bf16.mxu1 %v4452_v25  ;;  %2868 = vmatprep.subr.bf16.mxu0 %v4455_v31  ;;  %v4513_v59 = vld [vmem:[%s5931_s9 + $0xb0] sm:$0xff]   ;;  %v4514_v25 = vld [vmem:[%s5931_s9 + $0x78] sm:$0xff]  }
 0x1e1   :  { %v4515_v31 = vld [vmem:[%s5931_s9 + $0xf8] sm:$0xff]  }
 0x1e3   :  { %2664 = vmatpush1.bf16.msra.mxu1 %v4450_v33  ;;  %2869 = vmatpush1.bf16.msra.mxu0 %v4453_v23  ;;  %v4516_v33 = vld [vmem:[%s5931_s9 + $0x38] sm:$0xff]  }
 0x1e4   :  { %2665 = vmatprep.subr.bf16.mxu1 %v4458_v35  ;;  %2870 = vmatprep.subr.bf16.mxu0 %v4461_v1  ;;  %v4517_v23 = vld [vmem:[%s5931_s9 + $0xb8] sm:$0xff]   ;;  %v1033_v35 = vld [vmem:[%s5932_s6] sm:$0xf] }
 0x1e5   :  { %v1038_v1 = vrot.slane %v1033_v35, %v4910_v27 }
 0x1e7   :  { %2666 = vmatpush1.bf16.msra.mxu1 %v4456_v34  ;;  %2871 = vmatpush1.bf16.msra.mxu0 %v4459_v36  ;;  %v1046_v34 = vrot.slane %v1033_v35, %v4930_v54  ;;  %v1042_v36 = vrot.slane %v1033_v35, %v4918_v29 }
 0x1e8   :  { %2667 = vmatprep.subr.bf16.mxu1 %v4464_v39  ;;  %2872 = vmatprep.subr.bf16.mxu0 %v4467_v40  ;;  %v1050_v39 = vrot.slane %v1033_v35, %v4925_v37 }
 0x1eb   :  { %2668 = vmatpush1.bf16.msra.mxu1 %v4462_v30  ;;  %2873 = vmatpush1.bf16.msra.mxu0 %v4465_v7 }
 0x1ec   :  { %2669 = vmatprep.subr.bf16.mxu1 %v4470_v42  ;;  %2874 = vmatprep.subr.bf16.mxu0 %v4473_v44 }
 0x1ef   :  { %2670 = vmatpush1.bf16.msra.mxu1 %v4468_v46  ;;  %2875 = vmatpush1.bf16.msra.mxu0 %v4471_v47 }
 0x1f0   :  { %2671 = vmatprep.subr.bf16.mxu1 %v4476_v15  ;;  %2876 = vmatprep.subr.bf16.mxu0 %v4479_v18 }
 0x1f3   :  { %2672 = vmatpush1.bf16.msra.mxu1 %v4474_v24  ;;  %2877 = vmatpush1.bf16.msra.mxu0 %v4477_v51 }
 0x1f4   :  { %2673 = vmatprep.subr.bf16.mxu1 %v4482_v52  ;;  %2878 = vmatprep.subr.bf16.mxu0 %v4485_v53 }
 0x1f7   :  { %2674 = vmatpush1.bf16.msra.mxu1 %v4480_v3  ;;  %2879 = vmatpush1.bf16.msra.mxu0 %v4483_v57 }
 0x1f8   :  { %3908 = vmatprep.subr.bf16.mxu1 %v4486_v17  ;;  %3930 = vmatprep.subr.bf16.mxu0 %v4487_v48 }
 0x1fa   :  { %2692 = vmatmul.mubr.bf16.vlgmr.msra.gmra.mrb[4].mxu1 %v744_v41  ;;  %2897 = vmatmul.mubr.bf16.vlgmr.msra.gmra.mrb[16].mxu0 %v744_v41 }
 0x1fb   :  { %3909 = vmatpush3.bf16.msra.mxu1 %v4488_v62  ;;  %3931 = vmatpush3.bf16.msra.mxu0 %v4489_v43 }
 0x1fc   :  { %3910 = vmatprep.subr.bf16.mxu1 %v4490_v26  ;;  %3932 = vmatprep.subr.bf16.mxu0 %v4491_v55 }
 0x1ff   :  { %3911 = vmatpush3.bf16.msra.mxu1 %v4492_v2  ;;  %3933 = vmatpush3.bf16.msra.mxu0 %v4493_v63 }
 0x200   :  { %3912 = vmatprep.subr.bf16.mxu1 %v4494_v0  ;;  %3934 = vmatprep.subr.bf16.mxu0 %v4495_v4 }
 0x203   :  { %3913 = vmatpush3.bf16.msra.mxu1 %v4496_v5  ;;  %3935 = vmatpush3.bf16.msra.mxu0 %v4497_v6 }
 0x204   :  { %3914 = vmatprep.subr.bf16.mxu1 %v4498_v28  ;;  %3936 = vmatprep.subr.bf16.mxu0 %v4499_v8 }
 0x207   :  { %3915 = vmatpush3.bf16.msra.mxu1 %v4500_v22  ;;  %3937 = vmatpush3.bf16.msra.mxu0 %v4501_v9 }
 0x208   :  { %3916 = vmatprep.subr.bf16.mxu1 %v4502_v11  ;;  %3938 = vmatprep.subr.bf16.mxu0 %v4503_v12 }
 0x20b   :  { %3917 = vmatpush3.bf16.msra.mxu1 %v4504_v61  ;;  %3939 = vmatpush3.bf16.msra.mxu0 %v4505_v10 }
 0x20c   :  { %3918 = vmatprep.subr.bf16.mxu1 %v4506_v32  ;;  %3940 = vmatprep.subr.bf16.mxu0 %v4507_v19 }
 0x20f   :  { %3919 = vmatpush3.bf16.msra.mxu1 %v4508_v13  ;;  %3941 = vmatpush3.bf16.msra.mxu0 %v4509_v14 }
 0x210   :  { %3920 = vmatprep.subr.bf16.mxu1 %v4510_v58  ;;  %3942 = vmatprep.subr.bf16.mxu0 %v4511_v16 }
 0x213   :  { %3921 = vmatpush3.bf16.msra.mxu1 %v4512_v20  ;;  %3943 = vmatpush3.bf16.msra.mxu0 %v4513_v59 }
 0x214   :  { %3922 = vmatprep.subr.bf16.mxu1 %v4514_v25  ;;  %3944 = vmatprep.subr.bf16.mxu0 %v4515_v31 }
 0x217   :  { %3923 = vmatpush3.bf16.msra.mxu1 %v4516_v33  ;;  %3945 = vmatpush3.bf16.msra.mxu0 %v4517_v23 }
 0x218   :  { %3969 = vmatprep.subr.bf16.mxu1 %v4557_v21 }
 0x2cd   :  { %v2693_v40 = vpop.f32.mrb[4].mxu1  ;;  %v2898_v30 = vpop.f32.mrb[16].mxu0 }
 0x2ce   :  { %v3989_v7 = vadd.f32 %v2693_v40, %v1038_v1  ;;  %v3991_v42 = vadd.f32 %v2898_v30, %v1046_v34  ;;  %v2695_v44 = vpop.f32.mrb[5].mxu1  ;;  %v2900_v45 = vpop.f32.mrb[17].mxu0 }
 0x2cf   :  { %v3990_v46 = vadd.f32 %v2695_v44, %v1042_v36  ;;  %v3992_v47 = vadd.f32 %v2900_v45, %v1050_v39  ;;  %v2697_v49 = vpop.f32.mrb[6].mxu1  ;;  %v2902_v15 = vpop.f32.mrb[18].mxu0 }
 0x2d0   :  { %vm2905_vm11 = vcmp.gt.f32.partialorder %v3989_v7, 0.0  ;;  %v2909_v18 = vmul.f32 0.1, %v3989_v7  ;;  %vm2907_vm12 = vcmp.gt.f32.partialorder %v3991_v42, 0.0  ;;  %v2911_v50 = vmul.f32 0.1, %v3991_v42 }
 0x2d1   :  { %vm2906_vm13 = vcmp.gt.f32.partialorder %v3990_v46, 0.0  ;;  %v2910_v24 = vmul.f32 0.1, %v3990_v46  ;;  %vm2908_vm14 = vcmp.gt.f32.partialorder %v3992_v47, 0.0  ;;  %v2912_v51 = vmul.f32 0.1, %v3992_v47 }
 0x2d2   :  { %v2913_v52 = vsel %vm2905_vm11, %v3989_v7, %v2909_v18  ;;  %v2915_v53 = vsel %vm2907_vm12, %v3991_v42, %v2911_v50  ;;  %v2698_v38 = vpop.f32.mrb[7].mxu1  ;;  %v2903_v56 = vpop.f32.mrb[19].mxu0 }
 0x2d3   :  { %v2919_v3 = vrot.slane %v2913_v52, 4  ;;  %v2931_v57 = vrot.slane %v2915_v53, 4  ;;  %v2914_v60 = vsel %vm2906_vm13, %v3990_v46, %v2910_v24  ;;  %v2916_v41 = vsel %vm2908_vm14, %v3992_v47, %v2912_v51 }
 0x2d4   :  { %v2925_v17 = vrot.slane %v2914_v60, 4  ;;  %v2937_v48 = vrot.slane %v2916_v41, 4 }
 0x2d5   :  { %v2920_v62 = vadd.f32 %v2919_v3, %v2913_v52  ;;  %v2932_v43 = vadd.f32 %v2931_v57, %v2915_v53 }
 0x2d6   :  { %v2926_v26 = vadd.f32 %v2925_v17, %v2914_v60  ;;  %v2938_v55 = vadd.f32 %v2937_v48, %v2916_v41 }
 0x2d7   :  { %v2921_v2 = vrot.slane %v2920_v62, 2  ;;  %v2933_v63 = vrot.slane %v2932_v43, 2 }
 0x2d8   :  { %v2927_v0 = vrot.slane %v2926_v26, 2  ;;  %v2939_v4 = vrot.slane %v2938_v55, 2 }
 0x2d9   :  { %v2922_v5 = vadd.f32 %v2921_v2, %v2920_v62  ;;  %v2934_v6 = vadd.f32 %v2933_v63, %v2932_v43  ;;  %v2917_v63 = vld [vmem:[%s5933_s7] sm:$0xf] }
 0x2da   :  { %v2928_v28 = vadd.f32 %v2927_v0, %v2926_v26  ;;  %v2940_v8 = vadd.f32 %v2939_v4, %v2938_v55  ;;  %v2918_v0 = vld [vmem:[%s5934_s8] sm:$0xf]  ;;  %v2999_v4 = vrot.slane %v2917_v63, %v4910_v27 }
 0x2db   :  { %v2923_v22 = vrot.slane %v2922_v5, 1  ;;  %v2935_v9 = vrot.slane %v2934_v6, 1 }
 0x2dc   :  { %v2929_v11 = vrot.slane %v2928_v28, 1  ;;  %v2941_v12 = vrot.slane %v2940_v8, 1 }
 0x2dd   :  { %v2924_v61 = vadd.f32 %v2923_v22, %v2922_v5  ;;  %v2936_v10 = vadd.f32 %v2935_v9, %v2934_v6  ;;  %v3007_v6 = vrot.slane %v2917_v63, %v4930_v54  ;;  %v3003_v22 = vrot.slane %v2917_v63, %v4918_v29 }
 0x2de   :  { %v2930_v32 = vadd.f32 %v2929_v11, %v2928_v28  ;;  %v2942_v19 = vadd.f32 %v2941_v12, %v2940_v8  ;;  %v3011_v12 = vrot.slane %v2917_v63, %v4925_v37 }
 0x2df   :  { %v2943_v13 = vmul.f32 0.125, %v2924_v61  ;;  %v2945_v14 = vmul.f32 0.125, %v2936_v10  ;;  %v3024_v61 = vrot.slane %v2918_v0, %v4910_v27 }
 0x2e0   :  { %v2944_v58 = vmul.f32 0.125, %v2930_v32  ;;  %v2946_v16 = vmul.f32 0.125, %v2942_v19  ;;  %v3028_v19 = vrot.slane %v2918_v0, %v4918_v29  ;;  %v4518_v29 = vld [vmem:[%s5935_s13] sm:$0xff]  }
 0x2e1   :  { %v2947_v20 = vsub.f32 %v2913_v52, %v2943_v13  ;;  %v2949_v59 = vsub.f32 %v2915_v53, %v2945_v14  ;;  %v3032_v14 = vrot.slane %v2918_v0, %v4930_v54  ;;  %v4520_v54 = vld [vmem:[%s5935_s13 + $0x10] sm:$0xff]  }
 0x2e2   :  { %v2948_v25 = vsub.f32 %v2914_v60, %v2944_v58  ;;  %v2950_v31 = vsub.f32 %v2916_v41, %v2946_v16  ;;  %v3036_v16 = vrot.slane %v2918_v0, %v4925_v37  ;;  %v4519_v37 = vld [vmem:[%s5935_s13 + $0x8] sm:$0xff]  }
 0x2e3   :  { %v2951_v33 = vmul.f32 %v2947_v20, %v2947_v20  ;;  %v2953_v23 = vmul.f32 %v2949_v59, %v2949_v59 }
 0x2e4   :  { %v2952_v35 = vmul.f32 %v2948_v25, %v2948_v25  ;;  %v2954_v1 = vmul.f32 %v2950_v31, %v2950_v31 }
 0x2e5   :  { %v2955_v34 = vrot.slane %v2951_v33, 4  ;;  %v2967_v36 = vrot.slane %v2953_v23, 4 }
 0x2e6   :  { %v2961_v39 = vrot.slane %v2952_v35, 4  ;;  %v2973_v40 = vrot.slane %v2954_v1, 4 }
 0x2e7   :  { %v2956_v30 = vadd.f32 %v2955_v34, %v2951_v33  ;;  %v2968_v7 = vadd.f32 %v2967_v36, %v2953_v23 }
 0x2e8   :  { %v2962_v42 = vadd.f32 %v2961_v39, %v2952_v35  ;;  %v2974_v44 = vadd.f32 %v2973_v40, %v2954_v1  ;;  %v4522_v40 = vld [vmem:[%s5935_s13 + $0x20] sm:$0xff]  }
 0x2e9   :  { %v2957_v45 = vrot.slane %v2956_v30, 2  ;;  %v2969_v46 = vrot.slane %v2968_v7, 2 }
 0x2ea   :  { %v2963_v47 = vrot.slane %v2962_v42, 2  ;;  %v2975_v49 = vrot.slane %v2974_v44, 2 }
 0x2eb   :  { %v2958_v15 = vadd.f32 %v2957_v45, %v2956_v30  ;;  %v2970_v18 = vadd.f32 %v2969_v46, %v2968_v7  ;;  %v4523_v30 = vld [vmem:[%s5935_s13 + $0x28] sm:$0xff]   ;;  %v4524_v7 = vld [vmem:[%s5935_s13 + $0x30] sm:$0xff]   ;;  %v3861_v46 = vld [vmem:[%s5936_s10] ss:$0 sm:$0xff] }
 0x2ec   :  { %v2964_v50 = vadd.f32 %v2963_v47, %v2962_v42  ;;  %v2976_v24 = vadd.f32 %v2975_v49, %v2974_v44  ;;  %v4525_v42 = vld [vmem:[%s5935_s13 + $0x38] sm:$0xff]  }
 0x2ed   :  { %v2959_v51 = vrot.slane %v2958_v15, 1  ;;  %v2971_v52 = vrot.slane %v2970_v18, 1 }
 0x2ee   :  { %v2965_v53 = vrot.slane %v2964_v50, 1  ;;  %v2977_v38 = vrot.slane %v2976_v24, 1 }
 0x2ef   :  { %v2960_v56 = vadd.f32 %v2959_v51, %v2958_v15  ;;  %v2972_v3 = vadd.f32 %v2971_v52, %v2970_v18 }
 0x2f0   :  { %v2966_v57 = vadd.f32 %v2965_v53, %v2964_v50  ;;  %v2978_v60 = vadd.f32 %v2977_v38, %v2976_v24 }
 0x2f1   :  { %v2979_v41 = vmul.f32 0.125, %v2960_v56  ;;  %v2981_v17 = vmul.f32 0.125, %v2972_v3 }
 0x2f2   :  { %v2980_v48 = vmul.f32 0.125, %v2966_v57  ;;  %v2982_v62 = vmul.f32 0.125, %v2978_v60 }
 0x2f3   :  { %v2983_v43 = vadd.f32 1e-05, %v2979_v41  ;;  %v2985_v26 = vadd.f32 1e-05, %v2981_v17 }
 0x2f4   :  { %v2984_v55 = vadd.f32 1e-05, %v2980_v48  ;;  %v2986_v2 = vadd.f32 1e-05, %v2982_v62 }
 0x2f5   :  { %4544 = vrsqrt.f32 %v2983_v43 }
 0x2f6   :  { %4546 = vrsqrt.f32 %v2985_v26 }
 0x2f7   :  { %4548 = vrsqrt.f32 %v2984_v55 }
 0x2f8   :  { %4550 = vrsqrt.f32 %v2986_v2 }
 0x2ff   :  { %v4545_v5 = vpop.eup %4544 }
 0x300   :  { %v4547_v28 = vpop.eup %4546  ;;  %v2991_v8 = vmul.f32 %v4545_v5, %v2947_v20 }
 0x301   :  { %v4549_v9 = vpop.eup %4548  ;;  %v2993_v11 = vmul.f32 %v4547_v28, %v2949_v59 }
 0x302   :  { %v4551_v10 = vpop.eup %4550  ;;  %v2992_v32 = vmul.f32 %v4549_v9, %v2948_v25  ;;  %v3016_v13 = vmul.f32 %v2999_v4, %v2991_v8 }
 0x303   :  { %v2994_v58 = vmul.f32 %v4551_v10, %v2950_v31  ;;  %v3018_v33 = vmul.f32 %v3007_v6, %v2993_v11  ;;  %v4521_v31 = vld [vmem:[%s5935_s13 + $0x18] sm:$0xff]   ;;  %v3895_v11 = vld [vmem:[%s5938_s12] ss:$0 sm:$0xff] }
 0x304   :  { %v3017_v20 = vmul.f32 %v3003_v22, %v2992_v32  ;;  %v3041_v35 = vadd.f32 %v3024_v61, %v3016_v13  ;;  %v3894_v22 = vld [vmem:[%s5937_s11] ss:$0 sm:$0xff] }
 0x305   :  { %v3019_v23 = vmul.f32 %v3011_v12, %v2994_v58  ;;  %v3043_v59 = vadd.f32 %v3032_v14, %v3018_v33  ;;  %v3896_v32 = vld [vmem:[%s5939_s14] ss:$0 sm:$0xff] }
 0x306   :  { %v3042_v1 = vadd.f32 %v3028_v19, %v3017_v20  ;;  %v3045_v27 = vpack.c.bf16 %v3041_v35, %v3041_v35 }
 0x307   :  { %v3044_v34 = vadd.f32 %v3036_v16, %v3019_v23  ;;  %v3047_v25 = vpack.c.bf16 %v3043_v59, %v3043_v59 }
 0x308   :  { %v3046_v36 = vpack.c.bf16 %v3042_v1, %v3042_v1 }
 0x309   :  { %v3048_v39 = vpack.c.bf16 %v3044_v34, %v3044_v34 }
 0x30a   :  { %3344 = vmatprep.mubr.bf16.mxu1 %v3046_v36 }
 0x30b   :  { %3384 = vmatprep.mubr.bf16.mxu0 %v3048_v39  ;;  %3345 = vmatmul.mubr.bf16.vlgmr.msra.gmra.mrb[8].mxu1 %v3045_v27 }
 0x30c   :  { %3385 = vmatmul.mubr.bf16.vlgmr.msra.gmra.mrb[20].mxu0 %v3047_v25  ;;  %3985 = vmatprep.mubr.msk.bf16.mxu1 %vm4558_vm1, %v4557_v21 }
 0x30d   :  { %3970 = vmatpush3.bf16.msra.mxu1 %v4518_v29 }
 0x30e   :  { %3971 = vmatprep.subr.bf16.mxu1 %v4557_v21 }
 0x311   :  { %3972 = vmatpush3.bf16.msra.mxu1 %v4519_v37 }
 0x312   :  { %3973 = vmatprep.subr.bf16.mxu1 %v4557_v21 }
 0x315   :  { %3974 = vmatpush3.bf16.msra.mxu1 %v4520_v54 }
 0x316   :  { %3975 = vmatprep.subr.bf16.mxu1 %v4557_v21 }
 0x319   :  { %3976 = vmatpush3.bf16.msra.mxu1 %v4521_v31 }
 0x31a   :  { %3977 = vmatprep.subr.bf16.mxu1 %v4557_v21 }
 0x31d   :  { %3978 = vmatpush3.bf16.msra.mxu1 %v4522_v40 }
 0x31e   :  { %3979 = vmatprep.subr.bf16.mxu1 %v4557_v21 }
 0x321   :  { %3980 = vmatpush3.bf16.msra.mxu1 %v4523_v30 }
 0x322   :  { %3981 = vmatprep.subr.bf16.mxu1 %v4557_v21 }
 0x325   :  { %3982 = vmatpush3.bf16.msra.mxu1 %v4524_v7 }
 0x326   :  { %3983 = vmatprep.subr.bf16.mxu1 %v4557_v21 }
 0x329   :  { %3984 = vmatpush3.bf16.msra.mxu1 %v4525_v42 }
 0x3de   :  { %v3924_v44 = vpop.f32.mrb[8].mxu1 }
 0x3df   :  { %v3946_v45 = vpop.f32.mrb[20].mxu0  ;;  %v3925_v47 = vpop.f32.mrb[9].mxu1 }
 0x3e0   :  { %v3926_v49 = vadd.f32 %v3925_v47, %v3924_v44  ;;  %v3947_v15 = vpop.f32.mrb[21].mxu0  ;;  %v3927_v18 = vpop.f32.mrb[10].mxu1 }
 0x3e1   :  { %v3948_v50 = vadd.f32 %v3947_v15, %v3946_v45  ;;  %v3949_v24 = vpop.f32.mrb[22].mxu0  ;;  %v3928_v51 = vpop.f32.mrb[11].mxu1 }
 0x3e2   :  { %v3347_v52 = vadd.f32 %v3926_v49, %v3861_v46  ;;  %v3950_v53 = vpop.f32.mrb[23].mxu0 }
 0x3e4   :  { %v3387_v38 = vadd.f32 %v3948_v50, %v3347_v52 }
 0x3e6   :  { %vm3392_vm15 = vcmp.gt.f32.partialorder %v3387_v38, 0.0  ;;  %v3393_v56 = vmul.f32 0.1, %v3387_v38 }
 0x3e8   :  { %v3394_v21 = vsel %vm3392_vm15, %v3387_v38, %v3393_v56 }
 0x3e9   :  { %v3397_v3 = vrot.slane %v3394_v21, 4 }
 0x3eb   :  { %v3398_v57 = vadd.f32 %v3397_v3, %v3394_v21 }
 0x3ed   :  { %v3399_v60 = vrot.slane %v3398_v57, 2 }
 0x3ef   :  { %v3400_v41 = vadd.f32 %v3399_v60, %v3398_v57 }
 0x3f1   :  { %v3401_v17 = vrot.slane %v3400_v41, 1 }
 0x3f3   :  { %v3402_v48 = vadd.f32 %v3401_v17, %v3400_v41 }
 0x3f5   :  { %v3403_v62 = vmul.f32 0.125, %v3402_v48 }
 0x3f7   :  { %v3404_v43 = vsub.f32 %v3394_v21, %v3403_v62 }
 0x3f9   :  { %v3405_v26 = vmul.f32 %v3404_v43, %v3404_v43 }
 0x3fb   :  { %v3406_v55 = vrot.slane %v3405_v26, 4 }
 0x3fd   :  { %v3407_v2 = vadd.f32 %v3406_v55, %v3405_v26 }
 0x3ff   :  { %v3408_v63 = vrot.slane %v3407_v2, 2 }
 0x401   :  { %v3409_v0 = vadd.f32 %v3408_v63, %v3407_v2 }
 0x403   :  { %v3410_v4 = vrot.slane %v3409_v0, 1 }
 0x405   :  { %v3411_v5 = vadd.f32 %v3410_v4, %v3409_v0 }
 0x407   :  { %v3412_v6 = vmul.f32 0.125, %v3411_v5 }
 0x409   :  { %v3413_v28 = vadd.f32 1e-05, %v3412_v6 }
 0x40b   :  { %4552 = vrsqrt.f32 %v3413_v28 }
 0x415   :  { %v4553_v8 = vpop.eup %4552 }
 0x416   :  { %v3415_v9 = vmul.f32 %v4553_v8, %v3404_v43 }
 0x418   :  { %v3422_v12 = vmul.f32 %v3894_v22, %v3415_v9 }
 0x41a   :  { %v3429_v61 = vadd.f32 %v3895_v11, %v3422_v12 }
 0x41c   :  { %v3430_v10 = vpack.c.bf16 %v3429_v61, %v3429_v61 }
 0x41e   :  { %3986 = vmatmul.mubr.bf16.vlgmr.msra.gmra.mrb[12].mxu1 %v3430_v10 }
 0x4f1   :  { %v3536_v19 = vpop.f32.mrb[12].mxu1 }
 0x4f2   :  { %v3537_v13 = vadd.f32 %v3896_v32, %v3536_v19  ;;  %v3987_v14 = vpop.f32.mrb[13].mxu1 }
 0x4f3   :  { %v3539_v58 = vpop.f32.mrb[14].mxu1 }
 0x4f4   :  { %3542 = vst [vmem:[%s5940_s15] sm:$0xff] %v3537_v13  ;;  %v3988_v16 = vpop.f32.mrb[15].mxu1 }

</bundles_post_ra>
